<compile_context>
chip_gen: v5e
topology: v5e:2x2
jax: 0.10.0
libtpu: 0.0.40
codegen_flags: <defaults>
</compile_context>

<pallas_src>
import functools

import numpy as np
import jax
import jax.numpy as jnp
from jax import lax
from jax.experimental import pallas as pl
from jax.experimental.pallas import tpu as pltpu


def _pick_block(n, preferred, align):
    """Largest b <= preferred with b % align == 0 and n % b == 0, else n."""
    b = min(preferred, n)
    b -= b % align
    while b >= align:
        if n % b == 0:
            return b
        b -= align
    return n


def _softplus(z):
    # Overflow-safe log(1 + exp(z)) (naive form overflows f32 for z >~ 88).
    return jnp.maximum(z, 0.0) + jnp.log(1.0 + jnp.exp(-jnp.abs(z)))


# ----------------------------------------------------------------------------
# Fused kernel: distance slab (MXU) + 3-smallest positives + Gumbel top-3K
# negative sampling + per-anchor loss.  One grid step = TM anchor rows.
# ----------------------------------------------------------------------------
def dml_kernel(xa_ref, xb_ref, sq_all_ref, tgt_col_ref, tgt_row_ref, gmb_ref,
               loss_ref, valid_ref, *, margin, num_instances, num_neg):
    f32 = jnp.float32
    BIG = f32(1e30)

    # ---- distance slab: anchors (TM) x all points (N) -----------------------
    xa = xa_ref[...]                                    # (TM, D) bf16
    xb = xb_ref[...]                                    # (N,  D) bf16
    xa_f = xa.astype(f32)
    sq_a = jnp.sum(xa_f * xa_f, axis=1, keepdims=True)  # (TM, 1) f32
    gram = lax.dot_general(                             # (TM, N) on MXU, f32 acc
        xa, xb,
        dimension_numbers=(((1,), (1,)), ((), ())),
        preferred_element_type=f32)
    d2 = sq_a + sq_all_ref[...] - 2.0 * gram            # norms/subtraction in f32
    dist = jnp.sqrt(jnp.maximum(d2, 1e-12))             # (TM, N)

    tm, n_all = dist.shape
    col_i = lax.broadcasted_iota(jnp.int32, (tm, n_all), 1)
    row_i = lax.broadcasted_iota(jnp.int32, (tm, n_all), 0) + pl.program_id(0) * tm
    col_f = col_i.astype(f32)
    is_self = row_i == col_i

    same = tgt_col_ref[...] == tgt_row_ref[...]         # (TM, N)
    pos_mask = jnp.logical_and(same, jnp.logical_not(is_self))
    neg_mask = jnp.logical_not(same)

    # ---- three smallest positive distances per anchor (== sort()[:3]) -------
    def extract_min(vals):
        m = jnp.min(vals, axis=1, keepdims=True)        # (TM, 1)
        hit = vals == m
        first = jnp.min(jnp.where(hit, col_f, BIG), axis=1, keepdims=True)
        return m, jnp.where(col_f == first, BIG, vals)  # remove exactly one hit

    pos_vals = jnp.where(pos_mask, dist, BIG)
    p0, pos_vals = extract_min(pos_vals)
    p1, pos_vals = extract_min(pos_vals)
    p2, _ = extract_min(pos_vals)

    pos_loss = (_softplus(p0 - 0.95) * 0.25
                + _softplus(p1 - 1.05) * 0.125
                + _softplus(p2 - 1.12) * 0.0625) * (1.0 / 3.0)

    # ---- weighted sampling of 3*K negatives (Gumbel top-k, w/o replacement) --
    inv_m = 1.0 / float(num_neg)
    neg_f = neg_mask.astype(f32)
    mean = jnp.sum(neg_f * dist, axis=1, keepdims=True) * inv_m
    diff = dist - mean
    var = jnp.sum(neg_f * diff * diff, axis=1, keepdims=True) * inv_m
    logits = diff * diff * (0.5 / jnp.maximum(var, 1e-12))   # log prob weights
    scores = jnp.where(neg_mask, logits + gmb_ref[...], -BIG)

    sel = jnp.zeros((tm, n_all), f32)
    for _ in range(3 * num_instances):                  # static unroll, 3K picks
        m = jnp.max(scores, axis=1, keepdims=True)
        hit = scores == m
        first = jnp.min(jnp.where(hit, col_f, BIG), axis=1, keepdims=True)
        chosen = jnp.logical_and(col_f == first, m > -0.5 * BIG)
        sel = jnp.where(chosen, 1.0, sel)
        scores = jnp.where(chosen, -BIG, scores)

    # ---- negatives below (3rd smallest positive + 0.05) ----------------------
    thresh = p2 + 0.05                                  # (TM, 1)
    eff = sel * (dist < thresh).astype(f32)             # sampled & below threshold
    cnt = jnp.sum(eff, axis=1, keepdims=True)
    term = _softplus(50.0 * (margin - dist))            # stable, full width
    neg_sum = jnp.sum(eff * term, axis=1, keepdims=True)
    inv_cnt = pl.reciprocal(jnp.maximum(cnt, 1.0), approx=True)  # EUP slot
    neg_loss = 0.02 * neg_sum * inv_cnt

    valid = (cnt > 0.0).astype(f32)                     # row contributes?
    loss_ref[...] = valid * (pos_loss + neg_loss)
    valid_ref[...] = valid


# ----------------------------------------------------------------------------
# Forward pass wrapper
# ----------------------------------------------------------------------------
def distance_match_loss(inputs, targets, key, margin=1.0):
    x = jnp.asarray(inputs, jnp.float32)
    n, d = x.shape

    # Static batch structure (balanced P x K batch, as torch .resize requires).
    tnp = np.asarray(targets)
    assert tnp.shape == (n,)
    counts = np.unique(tnp, return_counts=True)[1]
    assert counts.min() == counts.max(), "balanced P x K batch required"
    num_instances = int(counts[0])                      # K
    num_neg = n - num_instances                         # M
    assert num_instances - 1 >= 3, "need >= 4 instances per class"
    assert 3 * num_instances <= num_neg, "multinomial w/o replacement needs 3K <= M"

    # bf16 operands for the MXU gram; norms from the same rounded values so the
    # ||xi||^2 + ||xj||^2 - 2<xi,xj> cancellation stays consistent.
    x_bf16 = x.astype(jnp.bfloat16)
    xq = x_bf16.astype(jnp.float32)
    sq_all = jnp.sum(xq * xq, axis=1)[None, :]          # (1, n) f32, lane layout
    tgt_f = jnp.asarray(tnp, jnp.float32)
    tgt_col = tgt_f[:, None]                            # (n, 1)
    tgt_row = tgt_f[None, :]                            # (1, n)

    # TODO(synk): RNG stream differs from torch.multinomial; Gumbel top-k keeps
    # the weighted sampling-without-replacement semantics.
    gmb = jax.random.gumbel(key, (n, n), dtype=jnp.float32)

    tm = _pick_block(n, 128, 8)                         # anchor tile (sublane-aligned)
    grid = (n // tm,)

    kern = functools.partial(dml_kernel, margin=float(margin),
                             num_instances=num_instances, num_neg=num_neg)
    row_loss, row_valid = pl.pallas_call(
        kern,
        out_shape=(jax.ShapeDtypeStruct((n, 1), jnp.float32),
                   jax.ShapeDtypeStruct((n, 1), jnp.float32)),
        grid=grid,
        in_specs=[
            pl.BlockSpec((tm, d), lambda i: (i, 0)),    # anchor rows (bf16)
            pl.BlockSpec((n, d), lambda i: (0, 0)),     # all rows (bf16), resident
            pl.BlockSpec((1, n), lambda i: (0, 0)),     # column squared norms
            pl.BlockSpec((tm, 1), lambda i: (i, 0)),    # anchor targets
            pl.BlockSpec((1, n), lambda i: (0, 0)),     # all targets
            pl.BlockSpec((tm, n), lambda i: (i, 0)),    # gumbel noise slab
        ],
        out_specs=(pl.BlockSpec((tm, 1), lambda i: (i, 0)),
                   pl.BlockSpec((tm, 1), lambda i: (i, 0))),
        compiler_params=pltpu.CompilerParams(
            dimension_semantics=("parallel",)),
    )(x_bf16, x_bf16, sq_all, tgt_col, tgt_row, gmb)

    total = jnp.sum(row_loss)
    any_valid = jnp.sum(row_valid) > 0.0
    # empty case in torch returns 0.0 * mean(pos_pair) == 0.0
    return jnp.where(any_valid, total / n, jnp.float32(0.0))


if __name__ == "__main__":
    key = jax.random.PRNGKey(0)
    k_x, k_sample = jax.random.split(key)

    # Balanced batch: 6 classes x 4 instances, 32-dim features.
    n_classes, k_inst, feat = 6, 4, 32
    n = n_classes * k_inst
    inputs = 0.15 * jax.random.normal(k_x, (n, feat), dtype=jnp.float32)
    targets = jnp.repeat(jnp.arange(n_classes, dtype=jnp.int32), k_inst)

    loss = distance_match_loss(inputs, targets, k_sample, margin=1.0)
    loss = jax.block_until_ready(loss)
    assert loss.shape == () and bool(jnp.isfinite(loss))
    print("KERNEL_OK")
</pallas_src>

<mosaic_0001>
module attributes {stable_mosaic.version = 11 : i64} {
  func.func @dml_kernel(%arg0: i32, %arg1: memref<24x32xbf16, #tpu.memory_space<vmem>>, %arg2: memref<24x32xbf16, #tpu.memory_space<vmem>>, %arg3: memref<1x24xf32, #tpu.memory_space<vmem>>, %arg4: memref<24x1xf32, #tpu.memory_space<vmem>>, %arg5: memref<1x24xf32, #tpu.memory_space<vmem>>, %arg6: memref<24x24xf32, #tpu.memory_space<vmem>>, %arg7: memref<24x1xf32, #tpu.memory_space<vmem>>, %arg8: memref<24x1xf32, #tpu.memory_space<vmem>>) attributes {dimension_semantics = [#tpu.dimension_semantics<parallel>], iteration_bounds = array<i64: 1>, scalar_prefetch = 0 : i64, scratch_operands = 0 : i64, tpu.core_type = #tpu.core_type<tc>, window_params = [{transform_indices = @transform_0, window_bounds = array<i64: 24, 32>}, {pipeline_mode = #tpu.pipeline_mode<synchronous>, transform_indices = @transform_1, window_bounds = array<i64: 24, 32>}, {pipeline_mode = #tpu.pipeline_mode<synchronous>, transform_indices = @transform_2, window_bounds = array<i64: 1, 24>}, {transform_indices = @transform_3, window_bounds = array<i64: 24, 1>}, {pipeline_mode = #tpu.pipeline_mode<synchronous>, transform_indices = @transform_4, window_bounds = array<i64: 1, 24>}, {transform_indices = @transform_5, window_bounds = array<i64: 24, 24>}, {transform_indices = @transform_6, window_bounds = array<i64: 24, 1>}, {transform_indices = @transform_7, window_bounds = array<i64: 24, 1>}]} {
    %c0 = arith.constant 0 : index
    %c0_0 = arith.constant 0 : index
    %0 = vector.load %arg1[%c0, %c0_0] : memref<24x32xbf16, #tpu.memory_space<vmem>>, vector<24x32xbf16>
    %c0_1 = arith.constant 0 : index
    %c0_2 = arith.constant 0 : index
    %1 = vector.load %arg2[%c0_1, %c0_2] : memref<24x32xbf16, #tpu.memory_space<vmem>>, vector<24x32xbf16>
    %2 = arith.extf %0 : vector<24x32xbf16> to vector<24x32xf32>
    %3 = arith.mulf %2, %2 : vector<24x32xf32>
    %cst = arith.constant dense<0.000000e+00> : vector<24xf32>
    %4 = vector.multi_reduction <add>, %3, %cst [1] : vector<24x32xf32> to vector<24xf32>
    %5 = vector.shape_cast %4 : vector<24xf32> to vector<24x1xf32>
    %cst_3 = arith.constant dense<0.000000e+00> : vector<24x24xf32>
    %6 = tpu.matmul %0, %1, %cst_3 {dimension_numbers = #tpu.dot_dimension_numbers<[1], [1], [0], [0], [0, 0, 1, 0], [], []>} : vector<24x32xbf16>, vector<24x32xbf16>, vector<24x24xf32> -> vector<24x24xf32>
    %c0_4 = arith.constant 0 : index
    %c0_5 = arith.constant 0 : index
    %7 = vector.load %arg3[%c0_4, %c0_5] : memref<1x24xf32, #tpu.memory_space<vmem>>, vector<1x24xf32>
    %8 = vector.broadcast %5 : vector<24x1xf32> to vector<24x24xf32>
    %9 = vector.broadcast %7 : vector<1x24xf32> to vector<24x24xf32>
    %10 = arith.addf %8, %9 : vector<24x24xf32>
    %cst_6 = arith.constant 2.000000e+00 : f32
    %11 = vector.broadcast %cst_6 : f32 to vector<24x24xf32>
    %12 = arith.mulf %11, %6 : vector<24x24xf32>
    %13 = arith.subf %10, %12 : vector<24x24xf32>
    %cst_7 = arith.constant 9.99999996E-13 : f32
    %14 = vector.broadcast %cst_7 : f32 to vector<24x24xf32>
    %15 = arith.maximumf %13, %14 : vector<24x24xf32>
    %16 = math.sqrt %15 : vector<24x24xf32>
    %17 = tpu.iota {dimensions = array<i32: 1>} : vector<24x24xi32>
    %18 = tpu.iota {dimensions = array<i32: 0>} : vector<24x24xi32>
    %c24_i32 = arith.constant 24 : i32
    %19 = arith.muli %arg0, %c24_i32 : i32
    %20 = vector.broadcast %19 : i32 to vector<24x24xi32>
    %21 = arith.addi %18, %20 : vector<24x24xi32>
    %22 = arith.sitofp %17 : vector<24x24xi32> to vector<24x24xf32>
    %23 = arith.cmpi eq, %21, %17 : vector<24x24xi32>
    %c0_8 = arith.constant 0 : index
    %c0_9 = arith.constant 0 : index
    %24 = vector.load %arg4[%c0_8, %c0_9] : memref<24x1xf32, #tpu.memory_space<vmem>>, vector<24x1xf32>
    %c0_10 = arith.constant 0 : index
    %c0_11 = arith.constant 0 : index
    %25 = vector.load %arg5[%c0_10, %c0_11] : memref<1x24xf32, #tpu.memory_space<vmem>>, vector<1x24xf32>
    %26 = vector.broadcast %24 : vector<24x1xf32> to vector<24x24xf32>
    %27 = vector.broadcast %25 : vector<1x24xf32> to vector<24x24xf32>
    %28 = arith.cmpf oeq, %26, %27 : vector<24x24xf32>
    %cst_12 = arith.constant dense<true> : vector<24x24xi1>
    %29 = arith.xori %23, %cst_12 : vector<24x24xi1>
    %30 = arith.andi %28, %29 : vector<24x24xi1>
    %cst_13 = arith.constant dense<true> : vector<24x24xi1>
    %31 = arith.xori %28, %cst_13 : vector<24x24xi1>
    %cst_14 = arith.constant 1.000000e+30 : f32
    %32 = vector.broadcast %cst_14 : f32 to vector<24x24xf32>
    %33 = arith.select %30, %16, %32 : vector<24x24xi1>, vector<24x24xf32>
    %cst_15 = arith.constant dense<0x7F800000> : vector<24xf32>
    %34 = vector.multi_reduction <minimumf>, %33, %cst_15 [1] : vector<24x24xf32> to vector<24xf32>
    %35 = vector.shape_cast %34 : vector<24xf32> to vector<24x1xf32>
    %36 = vector.broadcast %35 : vector<24x1xf32> to vector<24x24xf32>
    %37 = arith.cmpf oeq, %33, %36 : vector<24x24xf32>
    %cst_16 = arith.constant 1.000000e+30 : f32
    %38 = vector.broadcast %cst_16 : f32 to vector<24x24xf32>
    %39 = arith.select %37, %22, %38 : vector<24x24xi1>, vector<24x24xf32>
    %cst_17 = arith.constant dense<0x7F800000> : vector<24xf32>
    %40 = vector.multi_reduction <minimumf>, %39, %cst_17 [1] : vector<24x24xf32> to vector<24xf32>
    %41 = vector.shape_cast %40 : vector<24xf32> to vector<24x1xf32>
    %42 = vector.broadcast %41 : vector<24x1xf32> to vector<24x24xf32>
    %43 = arith.cmpf oeq, %22, %42 : vector<24x24xf32>
    %cst_18 = arith.constant 1.000000e+30 : f32
    %44 = vector.broadcast %cst_18 : f32 to vector<24x24xf32>
    %45 = arith.select %43, %44, %33 : vector<24x24xi1>, vector<24x24xf32>
    %cst_19 = arith.constant dense<0x7F800000> : vector<24xf32>
    %46 = vector.multi_reduction <minimumf>, %45, %cst_19 [1] : vector<24x24xf32> to vector<24xf32>
    %47 = vector.shape_cast %46 : vector<24xf32> to vector<24x1xf32>
    %48 = vector.broadcast %47 : vector<24x1xf32> to vector<24x24xf32>
    %49 = arith.cmpf oeq, %45, %48 : vector<24x24xf32>
    %cst_20 = arith.constant 1.000000e+30 : f32
    %50 = vector.broadcast %cst_20 : f32 to vector<24x24xf32>
    %51 = arith.select %49, %22, %50 : vector<24x24xi1>, vector<24x24xf32>
    %cst_21 = arith.constant dense<0x7F800000> : vector<24xf32>
    %52 = vector.multi_reduction <minimumf>, %51, %cst_21 [1] : vector<24x24xf32> to vector<24xf32>
    %53 = vector.shape_cast %52 : vector<24xf32> to vector<24x1xf32>
    %54 = vector.broadcast %53 : vector<24x1xf32> to vector<24x24xf32>
    %55 = arith.cmpf oeq, %22, %54 : vector<24x24xf32>
    %cst_22 = arith.constant 1.000000e+30 : f32
    %56 = vector.broadcast %cst_22 : f32 to vector<24x24xf32>
    %57 = arith.select %55, %56, %45 : vector<24x24xi1>, vector<24x24xf32>
    %cst_23 = arith.constant dense<0x7F800000> : vector<24xf32>
    %58 = vector.multi_reduction <minimumf>, %57, %cst_23 [1] : vector<24x24xf32> to vector<24xf32>
    %59 = vector.shape_cast %58 : vector<24xf32> to vector<24x1xf32>
    %cst_24 = arith.constant 0.949999988 : f32
    %60 = vector.broadcast %cst_24 : f32 to vector<24x1xf32>
    %61 = arith.subf %35, %60 : vector<24x1xf32>
    %cst_25 = arith.constant 0.000000e+00 : f32
    %62 = vector.broadcast %cst_25 : f32 to vector<24x1xf32>
    %63 = arith.maximumf %61, %62 : vector<24x1xf32>
    %64 = math.absf %61 : vector<24x1xf32>
    %cst_26 = arith.constant 0.000000e+00 : f32
    %65 = vector.broadcast %cst_26 : f32 to vector<24x1xf32>
    %66 = arith.subf %65, %64 : vector<24x1xf32>
    %67 = math.exp %66 : vector<24x1xf32>
    %cst_27 = arith.constant 1.000000e+00 : f32
    %68 = vector.broadcast %cst_27 : f32 to vector<24x1xf32>
    %69 = arith.addf %68, %67 : vector<24x1xf32>
    %70 = math.log %69 : vector<24x1xf32>
    %71 = arith.addf %63, %70 : vector<24x1xf32>
    %cst_28 = arith.constant 2.500000e-01 : f32
    %72 = vector.broadcast %cst_28 : f32 to vector<24x1xf32>
    %73 = arith.mulf %71, %72 : vector<24x1xf32>
    %cst_29 = arith.constant 1.050000e+00 : f32
    %74 = vector.broadcast %cst_29 : f32 to vector<24x1xf32>
    %75 = arith.subf %47, %74 : vector<24x1xf32>
    %cst_30 = arith.constant 0.000000e+00 : f32
    %76 = vector.broadcast %cst_30 : f32 to vector<24x1xf32>
    %77 = arith.maximumf %75, %76 : vector<24x1xf32>
    %78 = math.absf %75 : vector<24x1xf32>
    %cst_31 = arith.constant 0.000000e+00 : f32
    %79 = vector.broadcast %cst_31 : f32 to vector<24x1xf32>
    %80 = arith.subf %79, %78 : vector<24x1xf32>
    %81 = math.exp %80 : vector<24x1xf32>
    %cst_32 = arith.constant 1.000000e+00 : f32
    %82 = vector.broadcast %cst_32 : f32 to vector<24x1xf32>
    %83 = arith.addf %82, %81 : vector<24x1xf32>
    %84 = math.log %83 : vector<24x1xf32>
    %85 = arith.addf %77, %84 : vector<24x1xf32>
    %cst_33 = arith.constant 1.250000e-01 : f32
    %86 = vector.broadcast %cst_33 : f32 to vector<24x1xf32>
    %87 = arith.mulf %85, %86 : vector<24x1xf32>
    %88 = arith.addf %73, %87 : vector<24x1xf32>
    %cst_34 = arith.constant 1.120000e+00 : f32
    %89 = vector.broadcast %cst_34 : f32 to vector<24x1xf32>
    %90 = arith.subf %59, %89 : vector<24x1xf32>
    %cst_35 = arith.constant 0.000000e+00 : f32
    %91 = vector.broadcast %cst_35 : f32 to vector<24x1xf32>
    %92 = arith.maximumf %90, %91 : vector<24x1xf32>
    %93 = math.absf %90 : vector<24x1xf32>
    %cst_36 = arith.constant 0.000000e+00 : f32
    %94 = vector.broadcast %cst_36 : f32 to vector<24x1xf32>
    %95 = arith.subf %94, %93 : vector<24x1xf32>
    %96 = math.exp %95 : vector<24x1xf32>
    %cst_37 = arith.constant 1.000000e+00 : f32
    %97 = vector.broadcast %cst_37 : f32 to vector<24x1xf32>
    %98 = arith.addf %97, %96 : vector<24x1xf32>
    %99 = math.log %98 : vector<24x1xf32>
    %100 = arith.addf %92, %99 : vector<24x1xf32>
    %cst_38 = arith.constant 6.250000e-02 : f32
    %101 = vector.broadcast %cst_38 : f32 to vector<24x1xf32>
    %102 = arith.mulf %100, %101 : vector<24x1xf32>
    %103 = arith.addf %88, %102 : vector<24x1xf32>
    %cst_39 = arith.constant 0.333333343 : f32
    %104 = vector.broadcast %cst_39 : f32 to vector<24x1xf32>
    %105 = arith.mulf %103, %104 : vector<24x1xf32>
    %106 = arith.extui %31 : vector<24x24xi1> to vector<24x24xi32>
    %107 = arith.sitofp %106 : vector<24x24xi32> to vector<24x24xf32>
    %108 = arith.mulf %107, %16 : vector<24x24xf32>
    %cst_40 = arith.constant dense<0.000000e+00> : vector<24xf32>
    %109 = vector.multi_reduction <add>, %108, %cst_40 [1] : vector<24x24xf32> to vector<24xf32>
    %110 = vector.shape_cast %109 : vector<24xf32> to vector<24x1xf32>
    %cst_41 = arith.constant 5.000000e-02 : f32
    %111 = vector.broadcast %cst_41 : f32 to vector<24x1xf32>
    %112 = arith.mulf %110, %111 : vector<24x1xf32>
    %113 = vector.broadcast %112 : vector<24x1xf32> to vector<24x24xf32>
    %114 = arith.subf %16, %113 : vector<24x24xf32>
    %115 = arith.mulf %107, %114 : vector<24x24xf32>
    %116 = arith.mulf %115, %114 : vector<24x24xf32>
    %cst_42 = arith.constant dense<0.000000e+00> : vector<24xf32>
    %117 = vector.multi_reduction <add>, %116, %cst_42 [1] : vector<24x24xf32> to vector<24xf32>
    %118 = vector.shape_cast %117 : vector<24xf32> to vector<24x1xf32>
    %cst_43 = arith.constant 5.000000e-02 : f32
    %119 = vector.broadcast %cst_43 : f32 to vector<24x1xf32>
    %120 = arith.mulf %118, %119 : vector<24x1xf32>
    %121 = arith.mulf %114, %114 : vector<24x24xf32>
    %cst_44 = arith.constant 9.99999996E-13 : f32
    %122 = vector.broadcast %cst_44 : f32 to vector<24x1xf32>
    %123 = arith.maximumf %120, %122 : vector<24x1xf32>
    %cst_45 = arith.constant 5.000000e-01 : f32
    %124 = vector.broadcast %cst_45 : f32 to vector<24x1xf32>
    %125 = arith.divf %124, %123 : vector<24x1xf32>
    %126 = vector.broadcast %125 : vector<24x1xf32> to vector<24x24xf32>
    %127 = arith.mulf %121, %126 : vector<24x24xf32>
    %c0_46 = arith.constant 0 : index
    %c0_47 = arith.constant 0 : index
    %128 = vector.load %arg6[%c0_46, %c0_47] : memref<24x24xf32, #tpu.memory_space<vmem>>, vector<24x24xf32>
    %129 = arith.addf %127, %128 : vector<24x24xf32>
    %cst_48 = arith.constant 0.000000e+00 : f32
    %cst_49 = arith.constant 1.000000e+30 : f32
    %130 = arith.subf %cst_48, %cst_49 : f32
    %131 = vector.broadcast %130 : f32 to vector<24x24xf32>
    %132 = arith.select %31, %129, %131 : vector<24x24xi1>, vector<24x24xf32>
    %cst_50 = arith.constant 0.000000e+00 : f32
    %133 = vector.broadcast %cst_50 : f32 to vector<24x24xf32>
    %cst_51 = arith.constant dense<0xFF800000> : vector<24xf32>
    %134 = vector.multi_reduction <maximumf>, %132, %cst_51 [1] : vector<24x24xf32> to vector<24xf32>
    %135 = vector.shape_cast %134 : vector<24xf32> to vector<24x1xf32>
    %136 = vector.broadcast %135 : vector<24x1xf32> to vector<24x24xf32>
    %137 = arith.cmpf oeq, %132, %136 : vector<24x24xf32>
    %cst_52 = arith.constant 1.000000e+30 : f32
    %138 = vector.broadcast %cst_52 : f32 to vector<24x24xf32>
    %139 = arith.select %137, %22, %138 : vector<24x24xi1>, vector<24x24xf32>
    %cst_53 = arith.constant dense<0x7F800000> : vector<24xf32>
    %140 = vector.multi_reduction <minimumf>, %139, %cst_53 [1] : vector<24x24xf32> to vector<24xf32>
    %141 = vector.shape_cast %140 : vector<24xf32> to vector<24x1xf32>
    %142 = vector.broadcast %141 : vector<24x1xf32> to vector<24x24xf32>
    %143 = arith.cmpf oeq, %22, %142 : vector<24x24xf32>
    %cst_54 = arith.constant -5.000000e-01 : f32
    %cst_55 = arith.constant 1.000000e+30 : f32
    %144 = arith.mulf %cst_54, %cst_55 : f32
    %145 = vector.broadcast %144 : f32 to vector<24x1xf32>
    %146 = arith.cmpf ogt, %135, %145 : vector<24x1xf32>
    %147 = vector.broadcast %146 : vector<24x1xi1> to vector<24x24xi1>
    %148 = arith.andi %143, %147 : vector<24x24xi1>
    %cst_56 = arith.constant 1.000000e+00 : f32
    %149 = vector.broadcast %cst_56 : f32 to vector<24x24xf32>
    %150 = arith.select %148, %149, %133 : vector<24x24xi1>, vector<24x24xf32>
    %cst_57 = arith.constant 0.000000e+00 : f32
    %cst_58 = arith.constant 1.000000e+30 : f32
    %151 = arith.subf %cst_57, %cst_58 : f32
    %152 = vector.broadcast %151 : f32 to vector<24x24xf32>
    %153 = arith.select %148, %152, %132 : vector<24x24xi1>, vector<24x24xf32>
    %cst_59 = arith.constant dense<0xFF800000> : vector<24xf32>
    %154 = vector.multi_reduction <maximumf>, %153, %cst_59 [1] : vector<24x24xf32> to vector<24xf32>
    %155 = vector.shape_cast %154 : vector<24xf32> to vector<24x1xf32>
    %156 = vector.broadcast %155 : vector<24x1xf32> to vector<24x24xf32>
    %157 = arith.cmpf oeq, %153, %156 : vector<24x24xf32>
    %cst_60 = arith.constant 1.000000e+30 : f32
    %158 = vector.broadcast %cst_60 : f32 to vector<24x24xf32>
    %159 = arith.select %157, %22, %158 : vector<24x24xi1>, vector<24x24xf32>
    %cst_61 = arith.constant dense<0x7F800000> : vector<24xf32>
    %160 = vector.multi_reduction <minimumf>, %159, %cst_61 [1] : vector<24x24xf32> to vector<24xf32>
    %161 = vector.shape_cast %160 : vector<24xf32> to vector<24x1xf32>
    %162 = vector.broadcast %161 : vector<24x1xf32> to vector<24x24xf32>
    %163 = arith.cmpf oeq, %22, %162 : vector<24x24xf32>
    %cst_62 = arith.constant -5.000000e-01 : f32
    %cst_63 = arith.constant 1.000000e+30 : f32
    %164 = arith.mulf %cst_62, %cst_63 : f32
    %165 = vector.broadcast %164 : f32 to vector<24x1xf32>
    %166 = arith.cmpf ogt, %155, %165 : vector<24x1xf32>
    %167 = vector.broadcast %166 : vector<24x1xi1> to vector<24x24xi1>
    %168 = arith.andi %163, %167 : vector<24x24xi1>
    %cst_64 = arith.constant 1.000000e+00 : f32
    %169 = vector.broadcast %cst_64 : f32 to vector<24x24xf32>
    %170 = arith.select %168, %169, %150 : vector<24x24xi1>, vector<24x24xf32>
    %cst_65 = arith.constant 0.000000e+00 : f32
    %cst_66 = arith.constant 1.000000e+30 : f32
    %171 = arith.subf %cst_65, %cst_66 : f32
    %172 = vector.broadcast %171 : f32 to vector<24x24xf32>
    %173 = arith.select %168, %172, %153 : vector<24x24xi1>, vector<24x24xf32>
    %cst_67 = arith.constant dense<0xFF800000> : vector<24xf32>
    %174 = vector.multi_reduction <maximumf>, %173, %cst_67 [1] : vector<24x24xf32> to vector<24xf32>
    %175 = vector.shape_cast %174 : vector<24xf32> to vector<24x1xf32>
    %176 = vector.broadcast %175 : vector<24x1xf32> to vector<24x24xf32>
    %177 = arith.cmpf oeq, %173, %176 : vector<24x24xf32>
    %cst_68 = arith.constant 1.000000e+30 : f32
    %178 = vector.broadcast %cst_68 : f32 to vector<24x24xf32>
    %179 = arith.select %177, %22, %178 : vector<24x24xi1>, vector<24x24xf32>
    %cst_69 = arith.constant dense<0x7F800000> : vector<24xf32>
    %180 = vector.multi_reduction <minimumf>, %179, %cst_69 [1] : vector<24x24xf32> to vector<24xf32>
    %181 = vector.shape_cast %180 : vector<24xf32> to vector<24x1xf32>
    %182 = vector.broadcast %181 : vector<24x1xf32> to vector<24x24xf32>
    %183 = arith.cmpf oeq, %22, %182 : vector<24x24xf32>
    %cst_70 = arith.constant -5.000000e-01 : f32
    %cst_71 = arith.constant 1.000000e+30 : f32
    %184 = arith.mulf %cst_70, %cst_71 : f32
    %185 = vector.broadcast %184 : f32 to vector<24x1xf32>
    %186 = arith.cmpf ogt, %175, %185 : vector<24x1xf32>
    %187 = vector.broadcast %186 : vector<24x1xi1> to vector<24x24xi1>
    %188 = arith.andi %183, %187 : vector<24x24xi1>
    %cst_72 = arith.constant 1.000000e+00 : f32
    %189 = vector.broadcast %cst_72 : f32 to vector<24x24xf32>
    %190 = arith.select %188, %189, %170 : vector<24x24xi1>, vector<24x24xf32>
    %cst_73 = arith.constant 0.000000e+00 : f32
    %cst_74 = arith.constant 1.000000e+30 : f32
    %191 = arith.subf %cst_73, %cst_74 : f32
    %192 = vector.broadcast %191 : f32 to vector<24x24xf32>
    %193 = arith.select %188, %192, %173 : vector<24x24xi1>, vector<24x24xf32>
    %cst_75 = arith.constant dense<0xFF800000> : vector<24xf32>
    %194 = vector.multi_reduction <maximumf>, %193, %cst_75 [1] : vector<24x24xf32> to vector<24xf32>
    %195 = vector.shape_cast %194 : vector<24xf32> to vector<24x1xf32>
    %196 = vector.broadcast %195 : vector<24x1xf32> to vector<24x24xf32>
    %197 = arith.cmpf oeq, %193, %196 : vector<24x24xf32>
    %cst_76 = arith.constant 1.000000e+30 : f32
    %198 = vector.broadcast %cst_76 : f32 to vector<24x24xf32>
    %199 = arith.select %197, %22, %198 : vector<24x24xi1>, vector<24x24xf32>
    %cst_77 = arith.constant dense<0x7F800000> : vector<24xf32>
    %200 = vector.multi_reduction <minimumf>, %199, %cst_77 [1] : vector<24x24xf32> to vector<24xf32>
    %201 = vector.shape_cast %200 : vector<24xf32> to vector<24x1xf32>
    %202 = vector.broadcast %201 : vector<24x1xf32> to vector<24x24xf32>
    %203 = arith.cmpf oeq, %22, %202 : vector<24x24xf32>
    %cst_78 = arith.constant -5.000000e-01 : f32
    %cst_79 = arith.constant 1.000000e+30 : f32
    %204 = arith.mulf %cst_78, %cst_79 : f32
    %205 = vector.broadcast %204 : f32 to vector<24x1xf32>
    %206 = arith.cmpf ogt, %195, %205 : vector<24x1xf32>
    %207 = vector.broadcast %206 : vector<24x1xi1> to vector<24x24xi1>
    %208 = arith.andi %203, %207 : vector<24x24xi1>
    %cst_80 = arith.constant 1.000000e+00 : f32
    %209 = vector.broadcast %cst_80 : f32 to vector<24x24xf32>
    %210 = arith.select %208, %209, %190 : vector<24x24xi1>, vector<24x24xf32>
    %cst_81 = arith.constant 0.000000e+00 : f32
    %cst_82 = arith.constant 1.000000e+30 : f32
    %211 = arith.subf %cst_81, %cst_82 : f32
    %212 = vector.broadcast %211 : f32 to vector<24x24xf32>
    %213 = arith.select %208, %212, %193 : vector<24x24xi1>, vector<24x24xf32>
    %cst_83 = arith.constant dense<0xFF800000> : vector<24xf32>
    %214 = vector.multi_reduction <maximumf>, %213, %cst_83 [1] : vector<24x24xf32> to vector<24xf32>
    %215 = vector.shape_cast %214 : vector<24xf32> to vector<24x1xf32>
    %216 = vector.broadcast %215 : vector<24x1xf32> to vector<24x24xf32>
    %217 = arith.cmpf oeq, %213, %216 : vector<24x24xf32>
    %cst_84 = arith.constant 1.000000e+30 : f32
    %218 = vector.broadcast %cst_84 : f32 to vector<24x24xf32>
    %219 = arith.select %217, %22, %218 : vector<24x24xi1>, vector<24x24xf32>
    %cst_85 = arith.constant dense<0x7F800000> : vector<24xf32>
    %220 = vector.multi_reduction <minimumf>, %219, %cst_85 [1] : vector<24x24xf32> to vector<24xf32>
    %221 = vector.shape_cast %220 : vector<24xf32> to vector<24x1xf32>
    %222 = vector.broadcast %221 : vector<24x1xf32> to vector<24x24xf32>
    %223 = arith.cmpf oeq, %22, %222 : vector<24x24xf32>
    %cst_86 = arith.constant -5.000000e-01 : f32
    %cst_87 = arith.constant 1.000000e+30 : f32
    %224 = arith.mulf %cst_86, %cst_87 : f32
    %225 = vector.broadcast %224 : f32 to vector<24x1xf32>
    %226 = arith.cmpf ogt, %215, %225 : vector<24x1xf32>
    %227 = vector.broadcast %226 : vector<24x1xi1> to vector<24x24xi1>
    %228 = arith.andi %223, %227 : vector<24x24xi1>
    %cst_88 = arith.constant 1.000000e+00 : f32
    %229 = vector.broadcast %cst_88 : f32 to vector<24x24xf32>
    %230 = arith.select %228, %229, %210 : vector<24x24xi1>, vector<24x24xf32>
    %cst_89 = arith.constant 0.000000e+00 : f32
    %cst_90 = arith.constant 1.000000e+30 : f32
    %231 = arith.subf %cst_89, %cst_90 : f32
    %232 = vector.broadcast %231 : f32 to vector<24x24xf32>
    %233 = arith.select %228, %232, %213 : vector<24x24xi1>, vector<24x24xf32>
    %cst_91 = arith.constant dense<0xFF800000> : vector<24xf32>
    %234 = vector.multi_reduction <maximumf>, %233, %cst_91 [1] : vector<24x24xf32> to vector<24xf32>
    %235 = vector.shape_cast %234 : vector<24xf32> to vector<24x1xf32>
    %236 = vector.broadcast %235 : vector<24x1xf32> to vector<24x24xf32>
    %237 = arith.cmpf oeq, %233, %236 : vector<24x24xf32>
    %cst_92 = arith.constant 1.000000e+30 : f32
    %238 = vector.broadcast %cst_92 : f32 to vector<24x24xf32>
    %239 = arith.select %237, %22, %238 : vector<24x24xi1>, vector<24x24xf32>
    %cst_93 = arith.constant dense<0x7F800000> : vector<24xf32>
    %240 = vector.multi_reduction <minimumf>, %239, %cst_93 [1] : vector<24x24xf32> to vector<24xf32>
    %241 = vector.shape_cast %240 : vector<24xf32> to vector<24x1xf32>
    %242 = vector.broadcast %241 : vector<24x1xf32> to vector<24x24xf32>
    %243 = arith.cmpf oeq, %22, %242 : vector<24x24xf32>
    %cst_94 = arith.constant -5.000000e-01 : f32
    %cst_95 = arith.constant 1.000000e+30 : f32
    %244 = arith.mulf %cst_94, %cst_95 : f32
    %245 = vector.broadcast %244 : f32 to vector<24x1xf32>
    %246 = arith.cmpf ogt, %235, %245 : vector<24x1xf32>
    %247 = vector.broadcast %246 : vector<24x1xi1> to vector<24x24xi1>
    %248 = arith.andi %243, %247 : vector<24x24xi1>
    %cst_96 = arith.constant 1.000000e+00 : f32
    %249 = vector.broadcast %cst_96 : f32 to vector<24x24xf32>
    %250 = arith.select %248, %249, %230 : vector<24x24xi1>, vector<24x24xf32>
    %cst_97 = arith.constant 0.000000e+00 : f32
    %cst_98 = arith.constant 1.000000e+30 : f32
    %251 = arith.subf %cst_97, %cst_98 : f32
    %252 = vector.broadcast %251 : f32 to vector<24x24xf32>
    %253 = arith.select %248, %252, %233 : vector<24x24xi1>, vector<24x24xf32>
    %cst_99 = arith.constant dense<0xFF800000> : vector<24xf32>
    %254 = vector.multi_reduction <maximumf>, %253, %cst_99 [1] : vector<24x24xf32> to vector<24xf32>
    %255 = vector.shape_cast %254 : vector<24xf32> to vector<24x1xf32>
    %256 = vector.broadcast %255 : vector<24x1xf32> to vector<24x24xf32>
    %257 = arith.cmpf oeq, %253, %256 : vector<24x24xf32>
    %cst_100 = arith.constant 1.000000e+30 : f32
    %258 = vector.broadcast %cst_100 : f32 to vector<24x24xf32>
    %259 = arith.select %257, %22, %258 : vector<24x24xi1>, vector<24x24xf32>
    %cst_101 = arith.constant dense<0x7F800000> : vector<24xf32>
    %260 = vector.multi_reduction <minimumf>, %259, %cst_101 [1] : vector<24x24xf32> to vector<24xf32>
    %261 = vector.shape_cast %260 : vector<24xf32> to vector<24x1xf32>
    %262 = vector.broadcast %261 : vector<24x1xf32> to vector<24x24xf32>
    %263 = arith.cmpf oeq, %22, %262 : vector<24x24xf32>
    %cst_102 = arith.constant -5.000000e-01 : f32
    %cst_103 = arith.constant 1.000000e+30 : f32
    %264 = arith.mulf %cst_102, %cst_103 : f32
    %265 = vector.broadcast %264 : f32 to vector<24x1xf32>
    %266 = arith.cmpf ogt, %255, %265 : vector<24x1xf32>
    %267 = vector.broadcast %266 : vector<24x1xi1> to vector<24x24xi1>
    %268 = arith.andi %263, %267 : vector<24x24xi1>
    %cst_104 = arith.constant 1.000000e+00 : f32
    %269 = vector.broadcast %cst_104 : f32 to vector<24x24xf32>
    %270 = arith.select %268, %269, %250 : vector<24x24xi1>, vector<24x24xf32>
    %cst_105 = arith.constant 0.000000e+00 : f32
    %cst_106 = arith.constant 1.000000e+30 : f32
    %271 = arith.subf %cst_105, %cst_106 : f32
    %272 = vector.broadcast %271 : f32 to vector<24x24xf32>
    %273 = arith.select %268, %272, %253 : vector<24x24xi1>, vector<24x24xf32>
    %cst_107 = arith.constant dense<0xFF800000> : vector<24xf32>
    %274 = vector.multi_reduction <maximumf>, %273, %cst_107 [1] : vector<24x24xf32> to vector<24xf32>
    %275 = vector.shape_cast %274 : vector<24xf32> to vector<24x1xf32>
    %276 = vector.broadcast %275 : vector<24x1xf32> to vector<24x24xf32>
    %277 = arith.cmpf oeq, %273, %276 : vector<24x24xf32>
    %cst_108 = arith.constant 1.000000e+30 : f32
    %278 = vector.broadcast %cst_108 : f32 to vector<24x24xf32>
    %279 = arith.select %277, %22, %278 : vector<24x24xi1>, vector<24x24xf32>
    %cst_109 = arith.constant dense<0x7F800000> : vector<24xf32>
    %280 = vector.multi_reduction <minimumf>, %279, %cst_109 [1] : vector<24x24xf32> to vector<24xf32>
    %281 = vector.shape_cast %280 : vector<24xf32> to vector<24x1xf32>
    %282 = vector.broadcast %281 : vector<24x1xf32> to vector<24x24xf32>
    %283 = arith.cmpf oeq, %22, %282 : vector<24x24xf32>
    %cst_110 = arith.constant -5.000000e-01 : f32
    %cst_111 = arith.constant 1.000000e+30 : f32
    %284 = arith.mulf %cst_110, %cst_111 : f32
    %285 = vector.broadcast %284 : f32 to vector<24x1xf32>
    %286 = arith.cmpf ogt, %275, %285 : vector<24x1xf32>
    %287 = vector.broadcast %286 : vector<24x1xi1> to vector<24x24xi1>
    %288 = arith.andi %283, %287 : vector<24x24xi1>
    %cst_112 = arith.constant 1.000000e+00 : f32
    %289 = vector.broadcast %cst_112 : f32 to vector<24x24xf32>
    %290 = arith.select %288, %289, %270 : vector<24x24xi1>, vector<24x24xf32>
    %cst_113 = arith.constant 0.000000e+00 : f32
    %cst_114 = arith.constant 1.000000e+30 : f32
    %291 = arith.subf %cst_113, %cst_114 : f32
    %292 = vector.broadcast %291 : f32 to vector<24x24xf32>
    %293 = arith.select %288, %292, %273 : vector<24x24xi1>, vector<24x24xf32>
    %cst_115 = arith.constant dense<0xFF800000> : vector<24xf32>
    %294 = vector.multi_reduction <maximumf>, %293, %cst_115 [1] : vector<24x24xf32> to vector<24xf32>
    %295 = vector.shape_cast %294 : vector<24xf32> to vector<24x1xf32>
    %296 = vector.broadcast %295 : vector<24x1xf32> to vector<24x24xf32>
    %297 = arith.cmpf oeq, %293, %296 : vector<24x24xf32>
    %cst_116 = arith.constant 1.000000e+30 : f32
    %298 = vector.broadcast %cst_116 : f32 to vector<24x24xf32>
    %299 = arith.select %297, %22, %298 : vector<24x24xi1>, vector<24x24xf32>
    %cst_117 = arith.constant dense<0x7F800000> : vector<24xf32>
    %300 = vector.multi_reduction <minimumf>, %299, %cst_117 [1] : vector<24x24xf32> to vector<24xf32>
    %301 = vector.shape_cast %300 : vector<24xf32> to vector<24x1xf32>
    %302 = vector.broadcast %301 : vector<24x1xf32> to vector<24x24xf32>
    %303 = arith.cmpf oeq, %22, %302 : vector<24x24xf32>
    %cst_118 = arith.constant -5.000000e-01 : f32
    %cst_119 = arith.constant 1.000000e+30 : f32
    %304 = arith.mulf %cst_118, %cst_119 : f32
    %305 = vector.broadcast %304 : f32 to vector<24x1xf32>
    %306 = arith.cmpf ogt, %295, %305 : vector<24x1xf32>
    %307 = vector.broadcast %306 : vector<24x1xi1> to vector<24x24xi1>
    %308 = arith.andi %303, %307 : vector<24x24xi1>
    %cst_120 = arith.constant 1.000000e+00 : f32
    %309 = vector.broadcast %cst_120 : f32 to vector<24x24xf32>
    %310 = arith.select %308, %309, %290 : vector<24x24xi1>, vector<24x24xf32>
    %cst_121 = arith.constant 0.000000e+00 : f32
    %cst_122 = arith.constant 1.000000e+30 : f32
    %311 = arith.subf %cst_121, %cst_122 : f32
    %312 = vector.broadcast %311 : f32 to vector<24x24xf32>
    %313 = arith.select %308, %312, %293 : vector<24x24xi1>, vector<24x24xf32>
    %cst_123 = arith.constant dense<0xFF800000> : vector<24xf32>
    %314 = vector.multi_reduction <maximumf>, %313, %cst_123 [1] : vector<24x24xf32> to vector<24xf32>
    %315 = vector.shape_cast %314 : vector<24xf32> to vector<24x1xf32>
    %316 = vector.broadcast %315 : vector<24x1xf32> to vector<24x24xf32>
    %317 = arith.cmpf oeq, %313, %316 : vector<24x24xf32>
    %cst_124 = arith.constant 1.000000e+30 : f32
    %318 = vector.broadcast %cst_124 : f32 to vector<24x24xf32>
    %319 = arith.select %317, %22, %318 : vector<24x24xi1>, vector<24x24xf32>
    %cst_125 = arith.constant dense<0x7F800000> : vector<24xf32>
    %320 = vector.multi_reduction <minimumf>, %319, %cst_125 [1] : vector<24x24xf32> to vector<24xf32>
    %321 = vector.shape_cast %320 : vector<24xf32> to vector<24x1xf32>
    %322 = vector.broadcast %321 : vector<24x1xf32> to vector<24x24xf32>
    %323 = arith.cmpf oeq, %22, %322 : vector<24x24xf32>
    %cst_126 = arith.constant -5.000000e-01 : f32
    %cst_127 = arith.constant 1.000000e+30 : f32
    %324 = arith.mulf %cst_126, %cst_127 : f32
    %325 = vector.broadcast %324 : f32 to vector<24x1xf32>
    %326 = arith.cmpf ogt, %315, %325 : vector<24x1xf32>
    %327 = vector.broadcast %326 : vector<24x1xi1> to vector<24x24xi1>
    %328 = arith.andi %323, %327 : vector<24x24xi1>
    %cst_128 = arith.constant 1.000000e+00 : f32
    %329 = vector.broadcast %cst_128 : f32 to vector<24x24xf32>
    %330 = arith.select %328, %329, %310 : vector<24x24xi1>, vector<24x24xf32>
    %cst_129 = arith.constant 0.000000e+00 : f32
    %cst_130 = arith.constant 1.000000e+30 : f32
    %331 = arith.subf %cst_129, %cst_130 : f32
    %332 = vector.broadcast %331 : f32 to vector<24x24xf32>
    %333 = arith.select %328, %332, %313 : vector<24x24xi1>, vector<24x24xf32>
    %cst_131 = arith.constant dense<0xFF800000> : vector<24xf32>
    %334 = vector.multi_reduction <maximumf>, %333, %cst_131 [1] : vector<24x24xf32> to vector<24xf32>
    %335 = vector.shape_cast %334 : vector<24xf32> to vector<24x1xf32>
    %336 = vector.broadcast %335 : vector<24x1xf32> to vector<24x24xf32>
    %337 = arith.cmpf oeq, %333, %336 : vector<24x24xf32>
    %cst_132 = arith.constant 1.000000e+30 : f32
    %338 = vector.broadcast %cst_132 : f32 to vector<24x24xf32>
    %339 = arith.select %337, %22, %338 : vector<24x24xi1>, vector<24x24xf32>
    %cst_133 = arith.constant dense<0x7F800000> : vector<24xf32>
    %340 = vector.multi_reduction <minimumf>, %339, %cst_133 [1] : vector<24x24xf32> to vector<24xf32>
    %341 = vector.shape_cast %340 : vector<24xf32> to vector<24x1xf32>
    %342 = vector.broadcast %341 : vector<24x1xf32> to vector<24x24xf32>
    %343 = arith.cmpf oeq, %22, %342 : vector<24x24xf32>
    %cst_134 = arith.constant -5.000000e-01 : f32
    %cst_135 = arith.constant 1.000000e+30 : f32
    %344 = arith.mulf %cst_134, %cst_135 : f32
    %345 = vector.broadcast %344 : f32 to vector<24x1xf32>
    %346 = arith.cmpf ogt, %335, %345 : vector<24x1xf32>
    %347 = vector.broadcast %346 : vector<24x1xi1> to vector<24x24xi1>
    %348 = arith.andi %343, %347 : vector<24x24xi1>
    %cst_136 = arith.constant 1.000000e+00 : f32
    %349 = vector.broadcast %cst_136 : f32 to vector<24x24xf32>
    %350 = arith.select %348, %349, %330 : vector<24x24xi1>, vector<24x24xf32>
    %cst_137 = arith.constant 0.000000e+00 : f32
    %cst_138 = arith.constant 1.000000e+30 : f32
    %351 = arith.subf %cst_137, %cst_138 : f32
    %352 = vector.broadcast %351 : f32 to vector<24x24xf32>
    %353 = arith.select %348, %352, %333 : vector<24x24xi1>, vector<24x24xf32>
    %cst_139 = arith.constant dense<0xFF800000> : vector<24xf32>
    %354 = vector.multi_reduction <maximumf>, %353, %cst_139 [1] : vector<24x24xf32> to vector<24xf32>
    %355 = vector.shape_cast %354 : vector<24xf32> to vector<24x1xf32>
    %356 = vector.broadcast %355 : vector<24x1xf32> to vector<24x24xf32>
    %357 = arith.cmpf oeq, %353, %356 : vector<24x24xf32>
    %cst_140 = arith.constant 1.000000e+30 : f32
    %358 = vector.broadcast %cst_140 : f32 to vector<24x24xf32>
    %359 = arith.select %357, %22, %358 : vector<24x24xi1>, vector<24x24xf32>
    %cst_141 = arith.constant dense<0x7F800000> : vector<24xf32>
    %360 = vector.multi_reduction <minimumf>, %359, %cst_141 [1] : vector<24x24xf32> to vector<24xf32>
    %361 = vector.shape_cast %360 : vector<24xf32> to vector<24x1xf32>
    %362 = vector.broadcast %361 : vector<24x1xf32> to vector<24x24xf32>
    %363 = arith.cmpf oeq, %22, %362 : vector<24x24xf32>
    %cst_142 = arith.constant -5.000000e-01 : f32
    %cst_143 = arith.constant 1.000000e+30 : f32
    %364 = arith.mulf %cst_142, %cst_143 : f32
    %365 = vector.broadcast %364 : f32 to vector<24x1xf32>
    %366 = arith.cmpf ogt, %355, %365 : vector<24x1xf32>
    %367 = vector.broadcast %366 : vector<24x1xi1> to vector<24x24xi1>
    %368 = arith.andi %363, %367 : vector<24x24xi1>
    %cst_144 = arith.constant 1.000000e+00 : f32
    %369 = vector.broadcast %cst_144 : f32 to vector<24x24xf32>
    %370 = arith.select %368, %369, %350 : vector<24x24xi1>, vector<24x24xf32>
    %cst_145 = arith.constant 5.000000e-02 : f32
    %371 = vector.broadcast %cst_145 : f32 to vector<24x1xf32>
    %372 = arith.addf %59, %371 : vector<24x1xf32>
    %373 = vector.broadcast %372 : vector<24x1xf32> to vector<24x24xf32>
    %374 = arith.cmpf olt, %16, %373 : vector<24x24xf32>
    %375 = arith.extui %374 : vector<24x24xi1> to vector<24x24xi32>
    %376 = arith.sitofp %375 : vector<24x24xi32> to vector<24x24xf32>
    %377 = arith.mulf %370, %376 : vector<24x24xf32>
    %cst_146 = arith.constant dense<0.000000e+00> : vector<24xf32>
    %378 = vector.multi_reduction <add>, %377, %cst_146 [1] : vector<24x24xf32> to vector<24xf32>
    %379 = vector.shape_cast %378 : vector<24xf32> to vector<24x1xf32>
    %cst_147 = arith.constant 1.000000e+00 : f32
    %380 = vector.broadcast %cst_147 : f32 to vector<24x24xf32>
    %381 = arith.subf %380, %16 : vector<24x24xf32>
    %cst_148 = arith.constant 5.000000e+01 : f32
    %382 = vector.broadcast %cst_148 : f32 to vector<24x24xf32>
    %383 = arith.mulf %382, %381 : vector<24x24xf32>
    %cst_149 = arith.constant 0.000000e+00 : f32
    %384 = vector.broadcast %cst_149 : f32 to vector<24x24xf32>
    %385 = arith.maximumf %383, %384 : vector<24x24xf32>
    %386 = math.absf %383 : vector<24x24xf32>
    %cst_150 = arith.constant 0.000000e+00 : f32
    %387 = vector.broadcast %cst_150 : f32 to vector<24x24xf32>
    %388 = arith.subf %387, %386 : vector<24x24xf32>
    %389 = math.exp %388 : vector<24x24xf32>
    %cst_151 = arith.constant 1.000000e+00 : f32
    %390 = vector.broadcast %cst_151 : f32 to vector<24x24xf32>
    %391 = arith.addf %390, %389 : vector<24x24xf32>
    %392 = math.log %391 : vector<24x24xf32>
    %393 = arith.addf %385, %392 : vector<24x24xf32>
    %394 = arith.mulf %377, %393 : vector<24x24xf32>
    %cst_152 = arith.constant dense<0.000000e+00> : vector<24xf32>
    %395 = vector.multi_reduction <add>, %394, %cst_152 [1] : vector<24x24xf32> to vector<24xf32>
    %396 = vector.shape_cast %395 : vector<24xf32> to vector<24x1xf32>
    %cst_153 = arith.constant 1.000000e+00 : f32
    %397 = vector.broadcast %cst_153 : f32 to vector<24x1xf32>
    %398 = arith.maximumf %379, %397 : vector<24x1xf32>
    %399 = tpu.reciprocal %398 {approx = true} : vector<24x1xf32> -> vector<24x1xf32>
    %cst_154 = arith.constant 2.000000e-02 : f32
    %400 = vector.broadcast %cst_154 : f32 to vector<24x1xf32>
    %401 = arith.mulf %400, %396 : vector<24x1xf32>
    %402 = arith.mulf %401, %399 : vector<24x1xf32>
    %cst_155 = arith.constant 0.000000e+00 : f32
    %403 = vector.broadcast %cst_155 : f32 to vector<24x1xf32>
    %404 = arith.cmpf ogt, %379, %403 : vector<24x1xf32>
    %405 = arith.extui %404 : vector<24x1xi1> to vector<24x1xi32>
    %406 = arith.sitofp %405 : vector<24x1xi32> to vector<24x1xf32>
    %407 = arith.addf %105, %402 : vector<24x1xf32>
    %408 = arith.mulf %406, %407 : vector<24x1xf32>
    %c0_156 = arith.constant 0 : index
    %c0_157 = arith.constant 0 : index
    %409 = vector.load %arg7[%c0_156, %c0_157] : memref<24x1xf32, #tpu.memory_space<vmem>>, vector<24x1xf32>
    tpu.vector_store %arg7[%c0_156, %c0_157], %408 {strides = array<i32>} : memref<24x1xf32, #tpu.memory_space<vmem>>, vector<24x1xf32>,
    %c0_158 = arith.constant 0 : index
    %c0_159 = arith.constant 0 : index
    %410 = vector.load %arg8[%c0_158, %c0_159] : memref<24x1xf32, #tpu.memory_space<vmem>>, vector<24x1xf32>
    tpu.vector_store %arg8[%c0_158, %c0_159], %406 {strides = array<i32>} : memref<24x1xf32, #tpu.memory_space<vmem>>, vector<24x1xf32>,
    return
  }
  func.func @transform_0(%arg0: i32) -> (i32, i32) {
    %c0_i32 = arith.constant 0 : i32
    %c0_i32_0 = arith.constant 0 : i32
    return %arg0, %c0_i32 : i32, i32
  }
  func.func @transform_1(%arg0: i32) -> (i32, i32) {
    %c0_i32 = arith.constant 0 : i32
    %c0_i32_0 = arith.constant 0 : i32
    %c0_i32_1 = arith.constant 0 : i32
    return %c0_i32, %c0_i32_0 : i32, i32
  }
  func.func @transform_2(%arg0: i32) -> (i32, i32) {
    %c0_i32 = arith.constant 0 : i32
    %c0_i32_0 = arith.constant 0 : i32
    %c0_i32_1 = arith.constant 0 : i32
    return %c0_i32, %c0_i32_0 : i32, i32
  }
  func.func @transform_3(%arg0: i32) -> (i32, i32) {
    %c0_i32 = arith.constant 0 : i32
    %c0_i32_0 = arith.constant 0 : i32
    return %arg0, %c0_i32 : i32, i32
  }
  func.func @transform_4(%arg0: i32) -> (i32, i32) {
    %c0_i32 = arith.constant 0 : i32
    %c0_i32_0 = arith.constant 0 : i32
    %c0_i32_1 = arith.constant 0 : i32
    return %c0_i32, %c0_i32_0 : i32, i32
  }
  func.func @transform_5(%arg0: i32) -> (i32, i32) {
    %c0_i32 = arith.constant 0 : i32
    %c0_i32_0 = arith.constant 0 : i32
    return %arg0, %c0_i32 : i32, i32
  }
  func.func @transform_6(%arg0: i32) -> (i32, i32) {
    %c0_i32 = arith.constant 0 : i32
    %c0_i32_0 = arith.constant 0 : i32
    return %arg0, %c0_i32 : i32, i32
  }
  func.func @transform_7(%arg0: i32) -> (i32, i32) {
    %c0_i32 = arith.constant 0 : i32
    %c0_i32_0 = arith.constant 0 : i32
    return %arg0, %c0_i32 : i32, i32
  }
}

</mosaic_0001>

<bundles_post_ra>
// kernel: tpu_custom_call.1
= control target key start
LH: loop header
LB: loop body
LE: loop exit
PB: predicated region body
PF: predicated region fallthrough
CT: control target
= control target key end

     0   :  { %13 = vsyncpa [#allocation3], 0  ;;  %s2083_s0 = inlined_call_operand.hbm [shape: bf16[24,32], index: 0, kind: input, shape index: {}]   ;;  %s2084_s1 = inlined_call_operand.hbm [shape: bf16[24,32], index: 1, kind: input, shape index: {}]   ;;  %s2085_s2 = inlined_call_operand.vmem [shape: f32[1,24], index: 2, kind: input, shape index: {}]   ;;  %s2086_s3 = inlined_call_operand.vmem [shape: f32[24,1], index: 3, kind: input, shape index: {}]   ;;  %s2087_s4 = inlined_call_operand.vmem [shape: f32[1,24], index: 4, kind: input, shape index: {}]   ;;  %s2088_s5 = inlined_call_operand.vmem [shape: f32[24,24], index: 5, kind: input, shape index: {}]   ;;  %s2089_s6 = inlined_call_operand.vmem [shape: f32[24,1], index: 6, kind: output, shape index: {0}]   ;;  %s2090_s7 = inlined_call_operand.vmem [shape: f32[24,1], index: 7, kind: output, shape index: {1}]  }
   0x1   :  { %s19_s26 = sshll.u32 %s2083_s0, 4  ;;  %s20_s26 = int_to_ptr.hbm [resolvable:$true] %s19_s26 }
   0x2   :  { %14 = vsyncpa [#allocation5], 0  ;;  %s1325_s27 = smov [#allocation2]   ;;  %s32_s8 = sshll.u32 %s2084_s1, 4  ;;  %s33_s8 = int_to_ptr.hbm [resolvable:$true] %s32_s8 }
   0x3   :  { %s21_s28 = sshll.u32 %s1325_s27, 4  ;;  %s1326_s9 = smov 64   ;;  %s22_s28 = int_to_ptr.vmem [resolvable:$true] %s21_s28 }
   0x4   :  { %s1327_s10 = smov 4   ;;  %s1328_s11 = smov [#allocation4]  }
   0x5   :  { %27 = dma.hbm_to_vmem [thread:$0]  %s20_s26, 192, %s22_s28, [#allocation3], %s1326_s9, %s1326_s9, %s1327_s10  }
   0x6   :  { %s34_s12 = sshll.u32 %s1328_s11, 4  ;;  %s35_s12 = int_to_ptr.vmem [resolvable:$true] %s34_s12 }
   0x7   :  { %40 = dma.hbm_to_vmem [thread:$0]  %s33_s8, 192, %s35_s12, [#allocation5], %s1326_s9, %s1326_s9, %s1327_s10  }
   0x8   :  { %1321 = dma.done.wait [#allocation3], 192  }
   0x9   :  { %1322 = vsyncadd [#allocation3], 4294967104 }
   0xa   :  { %1323 = dma.done.wait [#allocation5], 192  }
   0xb   :  { %1324 = vsyncadd [#allocation5], 4294967104  ;;  %v1329_v0 = vmov 0   ;;  %v63_v1 = vld [vmem:[#allocation4 + $0x8] sm:$0xf]  ;;  %v58_v4 = vld [vmem:[#allocation2] sm:$0xff]   ;;  %v178_v24 = vlaneseq }
   0xc   :  { %1202 = vset.pattern.permute.xlu1 %v1329_v0  ;;  %1203 = vset.pattern.permute.xlu2 %v1329_v0  ;;  %v93_v2 = vunpack.c.l.b16 %v63_v1  ;;  %v60_v3 = vld [vmem:[#allocation2 + $0x8] sm:$0xf]  ;;  %vm70_vm0 = vcmask 261120   ;;  %v64_v6 = vunpack.c.l.bf16 %v58_v4  ;;  %v65_v11 = vunpack.c.h.bf16 %v58_v4  ;;  %v1192_v15 = vld [vmem:[#allocation4] sm:$0xff]  ;;  %v1191_v21 = vld [vmem:[#allocation2] sm:$0xff] }
   0xd   :  { %1204 = vset.pattern.permute.xlu0 %v1329_v0  ;;  %v66_v5 = vunpack.c.l.bf16 %v60_v3  ;;  %v194_v7 = vld [vmem:[%s2086_s3 + $0x8] sm:$0xff]  ;;  %v195_v17 = vld [vmem:[%s2086_s3 + $0x10] sm:$0xff]  ;;  %v103_v18 = vsel %vm70_vm0, %v1192_v15, 0  ;;  %v85_v20 = vunpack.c.l.b16 %v60_v3  ;;  %v193_v23 = vld [vmem:[%s2086_s3] sm:$0xff]  ;;  %v1396_v26 = vand.u32 127, %v178_v24 }
   0xe   :  { %v95_v8 = vpack.c.b16 %v93_v2, %v93_v2  ;;  %204 = vperm.xlu2 %1203, %v194_v7   ;;  %v67_v10 = vmul.f32 %v64_v6, %v64_v6  ;;  %v68_v16 = vmul.f32 %v65_v11, %v65_v11  ;;  %v181_v27 = vshrl.u32 %v178_v24, 7  ;;  %v1402_v29 = vld [vmem:[%s2087_s4] ss:$0 sm:$0xff]  ;;  %v506_v7 = vld [vmem:[%s2088_s5 + $0x10] sm:$0xff] }
   0xf   :  { %v69_v9 = vmul.f32 %v66_v5, %v66_v5  ;;  %v87_v22 = vpack.c.b16 %v85_v20, %v85_v20  ;;  %vm1330_vm2 = vmmov 1   ;;  %v1205_v34 = vld [vmem:[%s2085_s2] ss:$0 sm:$0xff] }
  0x10   :  { %v106_v12 = vsel %vm70_vm0, %v95_v8, 0  ;;  %v71_v14 = vsel %vm70_vm0, %v67_v10, 0.0  ;;  %v74_v19 = vsel %vm70_vm0, %v68_v16, 0.0  ;;  %v182_v28 = vadd.s32 8, %v181_v27 }
  0x11   :  { %114 = vmatpush.bf16.xpose.msra.mxu0 %v106_v12  ;;  %1193 = vmatpush.bf16.xpose.msra.mxu1 %v106_v12  ;;  %v77_v13 = vsel %vm70_vm0, %v69_v9, 0.0  ;;  %v183_v30 = vadd.s32 16, %v181_v27  ;;  %vm190_vm5 = vcmp.eq.s32.totalorder %v181_v27, %v1396_v26  ;;  %v1331_v12 = vmov 0.0  }
  0x12   :  { %78 = vadd.xlane.f32.xlu1 %v77_v13  ;;  %72 = vadd.xlane.f32.xlu0 %v71_v14  ;;  %vm191_vm1 = vcmp.eq.s32.totalorder %v182_v28, %v1396_v26  ;;  %vm218_vm11 = vmxor %vm190_vm5, %vm1330_vm2 }
  0x13   :  { %vm219_vm3 = vmxor %vm191_vm1, %vm1330_vm2  ;;  %vm192_vm4 = vcmp.eq.s32.totalorder %v183_v30, %v1396_v26 }
  0x14   :  { %vm220_vm7 = vmxor %vm192_vm4, %vm1330_vm2 }
  0x16   :  { %209 = vperm.xlu2 %1203, %v195_v17  }
  0x19   :  { %115 = vmatpush.bf16.xpose.msra.mxu0 %v103_v18  ;;  %1194 = vmatpush.bf16.xpose.msra.mxu1 %v103_v18 }
  0x1a   :  { %75 = vadd.xlane.f32.xlu0 %v74_v19 }
  0x20   :  { %1171 = vmatmul.msk.bf16.vlgmr.msra.gmra.mxu0 %vm70_vm0, %v1191_v21  ;;  %1172 = vmatmul.msk.bf16.vlgmr.msra.gmra.mxu1 %vm70_vm0, %v87_v22 }
  0x2b   :  { %199 = vperm.xlu1 %1202, %v193_v23  }
  0x68   :  { %v1394_v25 = vpop.permute.xlu2 %204 }
  0x69   :  { %vm216_vm6 = vcmp.eq.f32.partialorder %v1394_v25, %v1402_v29 }
  0x6a   :  { %vm1420_vm9 = vmand %vm216_vm6, %vm219_vm3  ;;  %vm230_vm3 = vcmask 195584  }
  0x6b   :  { %vm1464_vm5 = vmxor %vm216_vm6, %vm1330_vm2 }
  0x6c   :  { %v1183_v25 = vsel %vm1464_vm5, 1.0, %v1331_v12 }
  0x70   :  { %v1406_v32 = vpop.permute.xlu2 %209 }
  0x71   :  { %vm217_vm8 = vcmp.eq.f32.partialorder %v1406_v32, %v1402_v29 }
  0x72   :  { %vm1427_vm10 = vmand %vm217_vm8, %vm220_vm7 }
  0x73   :  { %vm1455_vm4 = vmxor %vm217_vm8, %vm1330_vm2 }
  0x74   :  { %v1184_v30 = vsel %vm1455_vm4, 1.0, %v1331_v12 }
  0x85   :  { %v79_v31 = vpop.xlane.xlu1 %78  ;;  %v73_v33 = vpop.xlane.xlu0 %72 }
  0x86   :  { %v132_v37 = vadd.f32 %v1205_v34, %v79_v31  ;;  %v130_v38 = vadd.f32 %v1205_v34, %v73_v33 }
  0x8d   :  { %v76_v47 = vpop.xlane.xlu0 %75 }
  0x8e   :  { %v131_v50 = vadd.f32 %v1205_v34, %v76_v47 }
  0x9d   :  { %v122_v39 = vpop.f32.mrf.mxu1  ;;  %v117_v40 = vpop.f32.mrf.mxu0 }
  0x9e   :  { %v135_v41 = vmul.f32 2.0, %v122_v39  ;;  %v133_v42 = vmul.f32 2.0, %v117_v40  ;;  %v200_v43 = vpop.permute.xlu1 %199 }
  0x9f   :  { %vm215_vm12 = vcmp.eq.f32.partialorder %v200_v43, %v1402_v29 }
  0xa0   :  { %v138_v44 = vsub.f32 %v132_v37, %v135_v41  ;;  %v136_v45 = vsub.f32 %v130_v38, %v133_v42  ;;  %vm1435_vm13 = vmand %vm215_vm12, %vm218_vm11 }
  0xa1   :  { %vm1442_vm14 = vmxor %vm215_vm12, %vm1330_vm2 }
  0xa2   :  { %v141_v48 = vmax.f32 %v138_v44, 1e-12  ;;  %v139_v49 = vmax.f32 %v136_v45, 1e-12  ;;  %v1182_v13 = vsel %vm1442_vm14, 1.0, %v1331_v12 }
  0xa4   :  { %1207 = vrsqrt.f32 %v141_v48  ;;  %vm149_vm15 = vcmp.eq.f32.partialorder %v139_v49, inf  ;;  %v152_v11 = vand.u32 2147483648, %v139_v49  ;;  %vm151_vm0 = vcmp.eq.f32.partialorder %v139_v49, 0.0 }
  0xa5   :  { %1209 = vrsqrt.f32 %v139_v49  ;;  %v119_v51 = vpop.f32.mrf.mxu0  ;;  %v124_v52 = vpop.f32.mrf.mxu1  ;;  %vm173_vm1 = vcmp.eq.f32.partialorder %v141_v48, inf  ;;  %v176_v21 = vand.u32 2147483648, %v141_v48  ;;  %vm175_vm7 = vcmp.eq.f32.partialorder %v141_v48, 0.0 }
  0xa6   :  { %v134_v53 = vmul.f32 2.0, %v119_v51 }
  0xa8   :  { %v137_v54 = vsub.f32 %v131_v50, %v134_v53 }
  0xaa   :  { %v1208_v55 = vpop.eup %1207  ;;  %v140_v56 = vmax.f32 %v137_v54, 1e-12 }
  0xab   :  { %v1210_v57 = vpop.eup %1209  ;;  %v167_v58 = vmul.f32 %v1208_v55, %v141_v48 }
  0xac   :  { %1211 = vrsqrt.f32 %v140_v56  ;;  %v143_v60 = vmul.f32 %v1210_v57, %v139_v49  ;;  %vm161_vm11 = vcmp.eq.f32.partialorder %v140_v56, inf  ;;  %v164_v27 = vand.u32 2147483648, %v140_v56 }
  0xad   :  { %v168_v59 = vmul.f32 %v1208_v55, %v167_v58  ;;  %vm163_vm8 = vcmp.eq.f32.partialorder %v140_v56, 0.0 }
  0xae   :  { %v144_v62 = vmul.f32 %v1210_v57, %v143_v60 }
  0xaf   :  { %v169_v61 = vmul.f32 0.5, %v168_v59 }
  0xb0   :  { %v145_v0 = vmul.f32 0.5, %v144_v62 }
  0xb1   :  { %v170_v63 = vsub.f32 1.5, %v169_v61 }
  0xb2   :  { %v1212_v1 = vpop.eup %1211  ;;  %v146_v4 = vsub.f32 1.5, %v145_v0 }
  0xb3   :  { %v155_v2 = vmul.f32 %v1212_v1, %v140_v56  ;;  %v171_v3 = vmul.f32 %v1208_v55, %v170_v63 }
  0xb4   :  { %v147_v6 = vmul.f32 %v1210_v57, %v146_v4 }
  0xb5   :  { %v156_v5 = vmul.f32 %v1212_v1, %v155_v2  ;;  %v172_v9 = vmul.f32 %v171_v3, %v141_v48 }
  0xb6   :  { %v148_v10 = vmul.f32 %v147_v6, %v139_v49 }
  0xb7   :  { %v157_v8 = vmul.f32 0.5, %v156_v5  ;;  %v174_v18 = vsel %vm173_vm1, %v141_v48, %v172_v9 }
  0xb8   :  { %v150_v15 = vsel %vm149_vm15, %v139_v49, %v148_v10  ;;  %v1469_v28 = vsel %vm175_vm7, %v176_v21, %v174_v18 }
  0xb9   :  { %v158_v14 = vsub.f32 1.5, %v157_v8  ;;  %v1449_v16 = vsel %vm151_vm0, %v152_v11, %v150_v15  ;;  %v416_v29 = vmul.f32 %v1184_v30, %v1469_v28 }
  0xba   :  { %v414_v20 = vmul.f32 %v1182_v13, %v1449_v16 }
  0xbb   :  { %v159_v17 = vmul.f32 %v1212_v1, %v158_v14  ;;  %v423_v37 = vsel %vm230_vm3, %v416_v29, 0.0  ;;  %v504_v29 = vld [vmem:[%s2088_s5] sm:$0xff] }
  0xbc   :  { %v417_v24 = vsel %vm230_vm3, %v414_v20, 0.0 }
  0xbd   :  { %v160_v22 = vmul.f32 %v159_v17, %v140_v56  ;;  %418 = vadd.xlane.f32.xlu0 %v417_v24 }
  0xbf   :  { %v162_v31 = vsel %vm161_vm11, %v140_v56, %v160_v22 }
  0xc0   :  { %v1474_v32 = vsel %vm163_vm8, %v164_v27, %v162_v31 }
  0xc1   :  { %v415_v33 = vmul.f32 %v1183_v25, %v1474_v32  ;;  %v228_v46 = vsel %vm1420_vm9, %v1474_v32, 1e+30 }
  0xc3   :  { %v420_v34 = vsel %vm230_vm3, %v415_v33, 0.0 }
  0xc4   :  { %421 = vadd.xlane.f32.xlu2 %v420_v34 }
  0xc5   :  { %424 = vadd.xlane.f32.xlu0 %v423_v37 }
 0x130   :  { %v419_v38 = vpop.xlane.xlu0 %418 }
 0x131   :  { %v426_v39 = vmul.f32 0.05, %v419_v38 }
 0x133   :  { %v429_v40 = vsub.f32 %v1449_v16, %v426_v39 }
 0x135   :  { %v432_v41 = vmul.f32 %v1182_v13, %v429_v40  ;;  %v450_v20 = vmul.f32 %v429_v40, %v429_v40 }
 0x137   :  { %v422_v42 = vpop.xlane.xlu2 %421  ;;  %v435_v44 = vmul.f32 %v432_v41, %v429_v40 }
 0x138   :  { %v427_v43 = vmul.f32 0.05, %v422_v42  ;;  %v425_v45 = vpop.xlane.xlu0 %424 }
 0x139   :  { %v428_v48 = vmul.f32 0.05, %v425_v45  ;;  %v438_v49 = vsel %vm230_vm3, %v435_v44, 0.0 }
 0x13a   :  { %v1485_v47 = vsub.f32 %v1474_v32, %v427_v43  ;;  %439 = vadd.xlane.f32.xlu0 %v438_v49 }
 0x13b   :  { %v1489_v50 = vsub.f32 %v1469_v28, %v428_v48 }
 0x13c   :  { %v433_v51 = vmul.f32 %v1183_v25, %v1485_v47  ;;  %v451_v43 = vmul.f32 %v1485_v47, %v1485_v47 }
 0x13d   :  { %v434_v53 = vmul.f32 %v1184_v30, %v1489_v50 }
 0x13e   :  { %v436_v52 = vmul.f32 %v433_v51, %v1485_v47 }
 0x13f   :  { %v437_v55 = vmul.f32 %v434_v53, %v1489_v50  ;;  %v505_v53 = vld [vmem:[%s2088_s5 + $0x8] sm:$0xff] }
 0x140   :  { %v441_v54 = vsel %vm230_vm3, %v436_v52, 0.0 }
 0x141   :  { %442 = vadd.xlane.f32.xlu1 %v441_v54  ;;  %v444_v56 = vsel %vm230_vm3, %v437_v55, 0.0  ;;  %v452_v55 = vmul.f32 %v1489_v50, %v1489_v50 }
 0x142   :  { %445 = vadd.xlane.f32.xlu0 %v444_v56 }
 0x1ad   :  { %v440_v57 = vpop.xlane.xlu0 %439 }
 0x1ae   :  { %v447_v58 = vmul.f32 0.05, %v440_v57 }
 0x1b0   :  { %v453_v59 = vmax.f32 %v447_v58, 1e-12 }
 0x1b2   :  { %1213 = vrcp.f32 %v453_v59  ;;  %v467_v5 = vand.u32 2147483648, %v453_v59  ;;  %v465_v8 = vand.u32 2147483647, %v453_v59  ;;  %vm461_vm6 = vweird.f32 %v453_v59 }
 0x1b4   :  { %v443_v60 = vpop.xlane.xlu1 %442  ;;  %v468_v14 = vor.u32 1.1754944e-38, %v467_v5  ;;  %vm466_vm15 = vcmp.eq.f32.partialorder %v465_v8, 8.507059e+37 }
 0x1b5   :  { %v448_v61 = vmul.f32 0.05, %v443_v60  ;;  %v446_v62 = vpop.xlane.xlu0 %445 }
 0x1b6   :  { %v449_v0 = vmul.f32 0.05, %v446_v62 }
 0x1b7   :  { %v454_v63 = vmax.f32 %v448_v61, 1e-12 }
 0x1b8   :  { %v1214_v1 = vpop.eup %1213  ;;  %v455_v2 = vmax.f32 %v449_v0, 1e-12 }
 0x1b9   :  { %1215 = vrcp.f32 %v454_v63  ;;  %v457_v3 = vmul.f32 %v1214_v1, %v453_v59  ;;  %vm462_vm2 = vweird.f32 %v1214_v1  ;;  %v482_v21 = vand.u32 2147483648, %v454_v63 }
 0x1ba   :  { %1217 = vrcp.f32 %v455_v2  ;;  %vm463_vm12 = vmor %vm461_vm6, %vm462_vm2  ;;  %v480_v24 = vand.u32 2147483647, %v454_v63  ;;  %vm476_vm1 = vweird.f32 %v454_v63  ;;  %v497_v25 = vand.u32 2147483648, %v455_v2 }
 0x1bb   :  { %v458_v4 = vsub.f32 1.0, %v457_v3  ;;  %v495_v33 = vand.u32 2147483647, %v455_v2  ;;  %vm491_vm11 = vweird.f32 %v455_v2  ;;  %v483_v39 = vor.u32 1.1754944e-38, %v482_v21 }
 0x1bc   :  { %vm481_vm2 = vcmp.eq.f32.partialorder %v480_v24, 8.507059e+37  ;;  %v498_v45 = vor.u32 1.1754944e-38, %v497_v25 }
 0x1bd   :  { %v459_v6 = vmul.f32 %v1214_v1, %v458_v4 }
 0x1bf   :  { %v1216_v9 = vpop.eup %1215  ;;  %v460_v11 = vadd.f32 %v1214_v1, %v459_v6 }
 0x1c0   :  { %v472_v10 = vmul.f32 %v1216_v9, %v454_v63  ;;  %v1218_v13 = vpop.eup %1217  ;;  %vm477_vm0 = vweird.f32 %v1216_v9  ;;  %v1520_v63 = vcvt.s32.f32 %v1396_v26 }
 0x1c1   :  { %v487_v17 = vmul.f32 %v1218_v13, %v455_v2  ;;  %v464_v18 = vsel %vm463_vm12, %v1214_v1, %v460_v11  ;;  %vm492_vm7 = vweird.f32 %v1218_v13  ;;  %vm478_vm8 = vmor %vm476_vm1, %vm477_vm0  ;;  %vm496_vm12 = vcmp.eq.f32.partialorder %v495_v33, 8.507059e+37 }
 0x1c2   :  { %v473_v15 = vsub.f32 1.0, %v472_v10  ;;  %v469_v22 = vsel %vm466_vm15, %v468_v14, %v464_v18  ;;  %vm493_vm6 = vmor %vm491_vm11, %vm492_vm7 }
 0x1c3   :  { %v488_v30 = vsub.f32 1.0, %v487_v17  ;;  %v470_v31 = vmul.f32 0.5, %v469_v22 }
 0x1c4   :  { %v474_v27 = vmul.f32 %v1216_v9, %v473_v15 }
 0x1c5   :  { %v489_v34 = vmul.f32 %v1218_v13, %v488_v30  ;;  %v501_v37 = vmul.f32 %v470_v31, %v450_v20 }
 0x1c6   :  { %v475_v38 = vadd.f32 %v1216_v9, %v474_v27 }
 0x1c7   :  { %v507_v40 = vadd.f32 %v504_v29, %v501_v37  ;;  %v490_v42 = vadd.f32 %v1218_v13, %v489_v34 }
 0x1c8   :  { %v479_v41 = vsel %vm478_vm8, %v1216_v9, %v475_v38 }
 0x1c9   :  { %v484_v44 = vsel %vm481_vm2, %v483_v39, %v479_v41  ;;  %v510_v48 = vsel %vm1442_vm14, %v507_v40, -1e+30  ;;  %v494_v51 = vsel %vm493_vm6, %v1218_v13, %v490_v42 }
 0x1ca   :  { %v485_v49 = vmul.f32 0.5, %v484_v44  ;;  %v513_v52 = vsel %vm230_vm3, %v510_v48, -inf  ;;  %v499_v54 = vsel %vm496_vm12, %v498_v45, %v494_v51 }
 0x1cb   :  { %514 = vmax.xlane.f32.xlu0 %v513_v52  ;;  %v500_v56 = vmul.f32 0.5, %v499_v54 }
 0x1cc   :  { %v502_v47 = vmul.f32 %v485_v49, %v451_v43 }
 0x1cd   :  { %v503_v58 = vmul.f32 %v500_v56, %v452_v55 }
 0x1ce   :  { %v508_v57 = vadd.f32 %v505_v53, %v502_v47 }
 0x1cf   :  { %v509_v60 = vadd.f32 %v506_v7, %v503_v58 }
 0x1d0   :  { %v511_v59 = vsel %vm1464_vm5, %v508_v57, -1e+30 }
 0x1d1   :  { %v516_v61 = vsel %vm230_vm3, %v511_v59, -inf  ;;  %v512_v62 = vsel %vm1455_vm4, %v509_v60, -1e+30 }
 0x1d2   :  { %v519_v50 = vsel %vm230_vm3, %v512_v62, -inf }
 0x1d3   :  { %517 = vmax.xlane.f32.xlu0 %v516_v61  ;;  %520 = vmax.xlane.f32.xlu2 %v519_v50 }
 0x23e   :  { %v515_v0 = vpop.xlane.xlu0 %514 }
 0x23f   :  { %vm522_vm14 = vcmp.eq.f32.partialorder %v510_v48, %v515_v0  ;;  %vm540_vm4 = vcmp.gt.f32.partialorder %v515_v0, -5e+29 }
 0x240   :  { %v525_v1 = vsel %vm522_vm14, %v1520_v63, 1e+30 }
 0x241   :  { %v528_v23 = vsel %vm230_vm3, %v525_v1, inf }
 0x242   :  { %529 = vmin.xlane.f32.xlu0 %v528_v23 }
 0x246   :  { %v521_v2 = vpop.xlane.xlu2 %520  ;;  %v518_v3 = vpop.xlane.xlu0 %517 }
 0x247   :  { %vm524_vm5 = vcmp.eq.f32.partialorder %v512_v62, %v521_v2  ;;  %vm523_vm15 = vcmp.eq.f32.partialorder %v511_v59, %v518_v3  ;;  %vm541_vm7 = vcmp.gt.f32.partialorder %v518_v3, -5e+29  ;;  %vm542_vm2 = vcmp.gt.f32.partialorder %v521_v2, -5e+29 }
 0x248   :  { %v527_v19 = vsel %vm524_vm5, %v1520_v63, 1e+30  ;;  %v526_v4 = vsel %vm523_vm15, %v1520_v63, 1e+30 }
 0x249   :  { %v534_v5 = vsel %vm230_vm3, %v527_v19, inf  ;;  %v531_v26 = vsel %vm230_vm3, %v526_v4, inf }
 0x24a   :  { %535 = vmin.xlane.f32.xlu0 %v534_v5  ;;  %532 = vmin.xlane.f32.xlu2 %v531_v26 }
 0x2b5   :  { %v530_v6 = vpop.xlane.xlu0 %529 }
 0x2b6   :  { %vm537_vm0 = vcmp.eq.f32.partialorder %v1520_v63, %v530_v6 }
 0x2b7   :  { %vm1529_vm1 = vmand %vm537_vm0, %vm540_vm4 }
 0x2b8   :  { %v555_v9 = vsel %vm1529_vm1, -1e+30, %v510_v48  ;;  %v552_v38 = vsel %vm1529_vm1, 1.0, %v1331_v12 }
 0x2b9   :  { %v558_v10 = vsel %vm230_vm3, %v555_v9, -inf }
 0x2ba   :  { %559 = vmax.xlane.f32.xlu2 %v558_v10 }
 0x2bd   :  { %v533_v11 = vpop.xlane.xlu2 %532  ;;  %v536_v13 = vpop.xlane.xlu0 %535 }
 0x2be   :  { %vm538_vm11 = vcmp.eq.f32.partialorder %v1520_v63, %v533_v11  ;;  %vm539_vm8 = vcmp.eq.f32.partialorder %v1520_v63, %v536_v13 }
 0x2bf   :  { %vm1538_vm6 = vmand %vm538_vm11, %vm541_vm7 }
 0x2c0   :  { %v556_v15 = vsel %vm1538_vm6, -1e+30, %v511_v59  ;;  %vm1544_vm12 = vmand %vm539_vm8, %vm542_vm2  ;;  %v553_v45 = vsel %vm1538_vm6, 1.0, %v1331_v12 }
 0x2c1   :  { %v557_v18 = vsel %vm1544_vm12, -1e+30, %v512_v62  ;;  %v561_v20 = vsel %vm230_vm3, %v556_v15, -inf  ;;  %v554_v49 = vsel %vm1544_vm12, 1.0, %v1331_v12 }
 0x2c2   :  { %562 = vmax.xlane.f32.xlu1 %v561_v20  ;;  %v564_v21 = vsel %vm230_vm3, %v557_v18, -inf }
 0x2c3   :  { %565 = vmax.xlane.f32.xlu0 %v564_v21 }
 0x32d   :  { %v560_v22 = vpop.xlane.xlu2 %559 }
 0x32e   :  { %vm567_vm14 = vcmp.eq.f32.partialorder %v555_v9, %v560_v22  ;;  %vm585_vm4 = vcmp.gt.f32.partialorder %v560_v22, -5e+29 }
 0x32f   :  { %v570_v24 = vsel %vm567_vm14, %v1520_v63, 1e+30 }
 0x330   :  { %v573_v27 = vsel %vm230_vm3, %v570_v24, inf }
 0x331   :  { %574 = vmin.xlane.f32.xlu2 %v573_v27 }
 0x335   :  { %v563_v30 = vpop.xlane.xlu1 %562 }
 0x336   :  { %vm568_vm5 = vcmp.eq.f32.partialorder %v556_v15, %v563_v30  ;;  %v566_v31 = vpop.xlane.xlu0 %565  ;;  %vm586_vm11 = vcmp.gt.f32.partialorder %v563_v30, -5e+29 }
 0x337   :  { %vm569_vm15 = vcmp.eq.f32.partialorder %v557_v18, %v566_v31  ;;  %v571_v25 = vsel %vm568_vm5, %v1520_v63, 1e+30  ;;  %vm587_vm1 = vcmp.gt.f32.partialorder %v566_v31, -5e+29 }
 0x338   :  { %v576_v29 = vsel %vm230_vm3, %v571_v25, inf  ;;  %v572_v33 = vsel %vm569_vm15, %v1520_v63, 1e+30 }
 0x339   :  { %577 = vmin.xlane.f32.xlu1 %v576_v29  ;;  %v579_v34 = vsel %vm230_vm3, %v572_v33, inf }
 0x33a   :  { %580 = vmin.xlane.f32.xlu0 %v579_v34 }
 0x3a4   :  { %v575_v37 = vpop.xlane.xlu2 %574 }
 0x3a5   :  { %vm582_vm0 = vcmp.eq.f32.partialorder %v1520_v63, %v575_v37 }
 0x3a6   :  { %vm1562_vm7 = vmand %vm582_vm0, %vm585_vm4 }
 0x3a7   :  { %v597_v40 = vsel %vm1562_vm7, 1.0, %v552_v38  ;;  %v600_v41 = vsel %vm1562_vm7, -1e+30, %v555_v9 }
 0x3a8   :  { %v603_v42 = vsel %vm230_vm3, %v600_v41, -inf }
 0x3a9   :  { %604 = vmax.xlane.f32.xlu2 %v603_v42 }
 0x3ac   :  { %v578_v43 = vpop.xlane.xlu1 %577 }
 0x3ad   :  { %vm583_vm8 = vcmp.eq.f32.partialorder %v1520_v63, %v578_v43  ;;  %v581_v44 = vpop.xlane.xlu0 %580 }
 0x3ae   :  { %vm1575_vm2 = vmand %vm583_vm8, %vm586_vm11  ;;  %vm584_vm14 = vcmp.eq.f32.partialorder %v1520_v63, %v581_v44 }
 0x3af   :  { %v598_v51 = vsel %vm1575_vm2, 1.0, %v553_v45  ;;  %v601_v52 = vsel %vm1575_vm2, -1e+30, %v556_v15  ;;  %vm1587_vm5 = vmand %vm584_vm14, %vm587_vm1 }
 0x3b0   :  { %v599_v54 = vsel %vm1587_vm5, 1.0, %v554_v49  ;;  %v602_v55 = vsel %vm1587_vm5, -1e+30, %v557_v18  ;;  %v606_v47 = vsel %vm230_vm3, %v601_v52, -inf }
 0x3b1   :  { %607 = vmax.xlane.f32.xlu1 %v606_v47  ;;  %v609_v56 = vsel %vm230_vm3, %v602_v55, -inf }
 0x3b2   :  { %610 = vmax.xlane.f32.xlu0 %v609_v56 }
 0x41c   :  { %v605_v7 = vpop.xlane.xlu2 %604 }
 0x41d   :  { %vm612_vm6 = vcmp.eq.f32.partialorder %v600_v41, %v605_v7  ;;  %vm630_vm4 = vcmp.gt.f32.partialorder %v605_v7, -5e+29 }
 0x41e   :  { %v615_v57 = vsel %vm612_vm6, %v1520_v63, 1e+30 }
 0x41f   :  { %v618_v58 = vsel %vm230_vm3, %v615_v57, inf }
 0x420   :  { %619 = vmin.xlane.f32.xlu2 %v618_v58 }
 0x424   :  { %v608_v59 = vpop.xlane.xlu1 %607 }
 0x425   :  { %vm613_vm12 = vcmp.eq.f32.partialorder %v601_v52, %v608_v59  ;;  %v611_v60 = vpop.xlane.xlu0 %610  ;;  %vm631_vm11 = vcmp.gt.f32.partialorder %v608_v59, -5e+29 }
 0x426   :  { %vm614_vm15 = vcmp.eq.f32.partialorder %v602_v55, %v611_v60  ;;  %v616_v61 = vsel %vm613_vm12, %v1520_v63, 1e+30  ;;  %vm632_vm1 = vcmp.gt.f32.partialorder %v611_v60, -5e+29 }
 0x427   :  { %v621_v62 = vsel %vm230_vm3, %v616_v61, inf  ;;  %v617_v50 = vsel %vm614_vm15, %v1520_v63, 1e+30 }
 0x428   :  { %622 = vmin.xlane.f32.xlu1 %v621_v62  ;;  %v624_v0 = vsel %vm230_vm3, %v617_v50, inf }
 0x429   :  { %625 = vmin.xlane.f32.xlu0 %v624_v0 }
 0x493   :  { %v620_v1 = vpop.xlane.xlu2 %619 }
 0x494   :  { %vm627_vm0 = vcmp.eq.f32.partialorder %v1520_v63, %v620_v1 }
 0x495   :  { %vm639_vm7 = vmand %vm627_vm0, %vm630_vm4 }
 0x496   :  { %v1604_v23 = vsel %vm639_vm7, 1.0, %v597_v40  ;;  %v645_v2 = vsel %vm639_vm7, -1e+30, %v600_v41 }
 0x497   :  { %v648_v3 = vsel %vm230_vm3, %v645_v2, -inf }
 0x498   :  { %649 = vmax.xlane.f32.xlu2 %v648_v3 }
 0x49b   :  { %v623_v19 = vpop.xlane.xlu1 %622 }
 0x49c   :  { %vm628_vm8 = vcmp.eq.f32.partialorder %v1520_v63, %v623_v19  ;;  %v626_v4 = vpop.xlane.xlu0 %625 }
 0x49d   :  { %vm640_vm2 = vmand %vm628_vm8, %vm631_vm11  ;;  %vm629_vm14 = vcmp.eq.f32.partialorder %v1520_v63, %v626_v4 }
 0x49e   :  { %v1609_v5 = vsel %vm640_vm2, 1.0, %v598_v51  ;;  %v646_v26 = vsel %vm640_vm2, -1e+30, %v601_v52  ;;  %vm641_vm5 = vmand %vm629_vm14, %vm632_vm1 }
 0x49f   :  { %v1611_v6 = vsel %vm641_vm5, 1.0, %v599_v54  ;;  %v647_v8 = vsel %vm641_vm5, -1e+30, %v602_v55  ;;  %v651_v9 = vsel %vm230_vm3, %v646_v26, -inf }
 0x4a0   :  { %652 = vmax.xlane.f32.xlu1 %v651_v9  ;;  %v654_v10 = vsel %vm230_vm3, %v647_v8, -inf }
 0x4a1   :  { %655 = vmax.xlane.f32.xlu0 %v654_v10 }
 0x50b   :  { %v650_v11 = vpop.xlane.xlu2 %649 }
 0x50c   :  { %vm657_vm6 = vcmp.eq.f32.partialorder %v645_v2, %v650_v11  ;;  %vm675_vm4 = vcmp.gt.f32.partialorder %v650_v11, -5e+29 }
 0x50d   :  { %v660_v13 = vsel %vm657_vm6, %v1520_v63, 1e+30 }
 0x50e   :  { %v663_v14 = vsel %vm230_vm3, %v660_v13, inf }
 0x50f   :  { %664 = vmin.xlane.f32.xlu2 %v663_v14 }
 0x513   :  { %v653_v15 = vpop.xlane.xlu1 %652 }
 0x514   :  { %vm658_vm12 = vcmp.eq.f32.partialorder %v646_v26, %v653_v15  ;;  %v656_v17 = vpop.xlane.xlu0 %655  ;;  %vm676_vm11 = vcmp.gt.f32.partialorder %v653_v15, -5e+29 }
 0x515   :  { %vm659_vm15 = vcmp.eq.f32.partialorder %v647_v8, %v656_v17  ;;  %v661_v18 = vsel %vm658_vm12, %v1520_v63, 1e+30  ;;  %vm677_vm1 = vcmp.gt.f32.partialorder %v656_v17, -5e+29 }
 0x516   :  { %v666_v20 = vsel %vm230_vm3, %v661_v18, inf  ;;  %v662_v21 = vsel %vm659_vm15, %v1520_v63, 1e+30 }
 0x517   :  { %667 = vmin.xlane.f32.xlu1 %v666_v20  ;;  %v669_v22 = vsel %vm230_vm3, %v662_v21, inf }
 0x518   :  { %670 = vmin.xlane.f32.xlu0 %v669_v22 }
 0x582   :  { %v665_v24 = vpop.xlane.xlu2 %664 }
 0x583   :  { %vm672_vm0 = vcmp.eq.f32.partialorder %v1520_v63, %v665_v24 }
 0x584   :  { %vm1622_vm7 = vmand %vm672_vm0, %vm675_vm4 }
 0x585   :  { %v687_v30 = vsel %vm1622_vm7, 1.0, %v1604_v23  ;;  %v690_v31 = vsel %vm1622_vm7, -1e+30, %v645_v2 }
 0x586   :  { %v693_v25 = vsel %vm230_vm3, %v690_v31, -inf }
 0x587   :  { %694 = vmax.xlane.f32.xlu2 %v693_v25 }
 0x58a   :  { %v668_v29 = vpop.xlane.xlu1 %667 }
 0x58b   :  { %vm673_vm8 = vcmp.eq.f32.partialorder %v1520_v63, %v668_v29  ;;  %v671_v33 = vpop.xlane.xlu0 %670 }
 0x58c   :  { %vm1633_vm2 = vmand %vm673_vm8, %vm676_vm11  ;;  %vm674_vm14 = vcmp.eq.f32.partialorder %v1520_v63, %v671_v33 }
 0x58d   :  { %v688_v37 = vsel %vm1633_vm2, 1.0, %v1609_v5  ;;  %v691_v38 = vsel %vm1633_vm2, -1e+30, %v646_v26  ;;  %vm1643_vm5 = vmand %vm674_vm14, %vm677_vm1 }
 0x58e   :  { %v689_v40 = vsel %vm1643_vm5, 1.0, %v1611_v6  ;;  %v692_v41 = vsel %vm1643_vm5, -1e+30, %v647_v8  ;;  %v696_v42 = vsel %vm230_vm3, %v691_v38, -inf }
 0x58f   :  { %697 = vmax.xlane.f32.xlu1 %v696_v42  ;;  %v699_v43 = vsel %vm230_vm3, %v692_v41, -inf }
 0x590   :  { %700 = vmax.xlane.f32.xlu0 %v699_v43 }
 0x5fa   :  { %v695_v44 = vpop.xlane.xlu2 %694 }
 0x5fb   :  { %vm702_vm6 = vcmp.eq.f32.partialorder %v690_v31, %v695_v44  ;;  %vm720_vm4 = vcmp.gt.f32.partialorder %v695_v44, -5e+29 }
 0x5fc   :  { %v705_v45 = vsel %vm702_vm6, %v1520_v63, 1e+30 }
 0x5fd   :  { %v708_v48 = vsel %vm230_vm3, %v705_v45, inf }
 0x5fe   :  { %709 = vmin.xlane.f32.xlu2 %v708_v48 }
 0x602   :  { %v698_v49 = vpop.xlane.xlu1 %697 }
 0x603   :  { %vm703_vm12 = vcmp.eq.f32.partialorder %v691_v38, %v698_v49  ;;  %v701_v51 = vpop.xlane.xlu0 %700  ;;  %vm721_vm11 = vcmp.gt.f32.partialorder %v698_v49, -5e+29 }
 0x604   :  { %vm704_vm15 = vcmp.eq.f32.partialorder %v692_v41, %v701_v51  ;;  %v706_v52 = vsel %vm703_vm12, %v1520_v63, 1e+30  ;;  %vm722_vm1 = vcmp.gt.f32.partialorder %v701_v51, -5e+29 }
 0x605   :  { %v711_v53 = vsel %vm230_vm3, %v706_v52, inf  ;;  %v707_v54 = vsel %vm704_vm15, %v1520_v63, 1e+30 }
 0x606   :  { %712 = vmin.xlane.f32.xlu1 %v711_v53  ;;  %v714_v55 = vsel %vm230_vm3, %v707_v54, inf }
 0x607   :  { %715 = vmin.xlane.f32.xlu0 %v714_v55 }
 0x671   :  { %v710_v47 = vpop.xlane.xlu2 %709 }
 0x672   :  { %vm717_vm0 = vcmp.eq.f32.partialorder %v1520_v63, %v710_v47 }
 0x673   :  { %vm729_vm7 = vmand %vm717_vm0, %vm720_vm4 }
 0x674   :  { %v1661_v56 = vsel %vm729_vm7, 1.0, %v687_v30  ;;  %v735_v7 = vsel %vm729_vm7, -1e+30, %v690_v31 }
 0x675   :  { %v738_v57 = vsel %vm230_vm3, %v735_v7, -inf }
 0x676   :  { %739 = vmax.xlane.f32.xlu2 %v738_v57 }
 0x679   :  { %v713_v58 = vpop.xlane.xlu1 %712 }
 0x67a   :  { %vm718_vm8 = vcmp.eq.f32.partialorder %v1520_v63, %v713_v58  ;;  %v716_v59 = vpop.xlane.xlu0 %715 }
 0x67b   :  { %vm730_vm2 = vmand %vm718_vm8, %vm721_vm11  ;;  %vm719_vm14 = vcmp.eq.f32.partialorder %v1520_v63, %v716_v59 }
 0x67c   :  { %v1666_v60 = vsel %vm730_vm2, 1.0, %v688_v37  ;;  %v736_v61 = vsel %vm730_vm2, -1e+30, %v691_v38  ;;  %vm731_vm5 = vmand %vm719_vm14, %vm722_vm1 }
 0x67d   :  { %v1668_v62 = vsel %vm731_vm5, 1.0, %v689_v40  ;;  %v737_v50 = vsel %vm731_vm5, -1e+30, %v692_v41  ;;  %v741_v0 = vsel %vm230_vm3, %v736_v61, -inf }
 0x67e   :  { %742 = vmax.xlane.f32.xlu1 %v741_v0  ;;  %v744_v1 = vsel %vm230_vm3, %v737_v50, -inf }
 0x67f   :  { %745 = vmax.xlane.f32.xlu0 %v744_v1 }
 0x6e9   :  { %v740_v23 = vpop.xlane.xlu2 %739 }
 0x6ea   :  { %vm747_vm6 = vcmp.eq.f32.partialorder %v735_v7, %v740_v23  ;;  %vm765_vm4 = vcmp.gt.f32.partialorder %v740_v23, -5e+29 }
 0x6eb   :  { %v750_v2 = vsel %vm747_vm6, %v1520_v63, 1e+30 }
 0x6ec   :  { %v753_v3 = vsel %vm230_vm3, %v750_v2, inf }
 0x6ed   :  { %754 = vmin.xlane.f32.xlu2 %v753_v3 }
 0x6f1   :  { %v743_v19 = vpop.xlane.xlu1 %742 }
 0x6f2   :  { %vm748_vm12 = vcmp.eq.f32.partialorder %v736_v61, %v743_v19  ;;  %v746_v4 = vpop.xlane.xlu0 %745  ;;  %vm766_vm11 = vcmp.gt.f32.partialorder %v743_v19, -5e+29 }
 0x6f3   :  { %vm749_vm15 = vcmp.eq.f32.partialorder %v737_v50, %v746_v4  ;;  %v751_v5 = vsel %vm748_vm12, %v1520_v63, 1e+30  ;;  %vm767_vm1 = vcmp.gt.f32.partialorder %v746_v4, -5e+29 }
 0x6f4   :  { %v756_v26 = vsel %vm230_vm3, %v751_v5, inf  ;;  %v752_v6 = vsel %vm749_vm15, %v1520_v63, 1e+30 }
 0x6f5   :  { %757 = vmin.xlane.f32.xlu1 %v756_v26  ;;  %v759_v8 = vsel %vm230_vm3, %v752_v6, inf }
 0x6f6   :  { %760 = vmin.xlane.f32.xlu0 %v759_v8 }
 0x760   :  { %v755_v9 = vpop.xlane.xlu2 %754 }
 0x761   :  { %vm762_vm0 = vcmp.eq.f32.partialorder %v1520_v63, %v755_v9 }
 0x762   :  { %vm1679_vm7 = vmand %vm762_vm0, %vm765_vm4 }
 0x763   :  { %v777_v11 = vsel %vm1679_vm7, 1.0, %v1661_v56  ;;  %v780_v13 = vsel %vm1679_vm7, -1e+30, %v735_v7 }
 0x764   :  { %v783_v14 = vsel %vm230_vm3, %v780_v13, -inf }
 0x765   :  { %784 = vmax.xlane.f32.xlu2 %v783_v14 }
 0x768   :  { %v758_v15 = vpop.xlane.xlu1 %757 }
 0x769   :  { %vm763_vm8 = vcmp.eq.f32.partialorder %v1520_v63, %v758_v15  ;;  %v761_v17 = vpop.xlane.xlu0 %760 }
 0x76a   :  { %vm1690_vm2 = vmand %vm763_vm8, %vm766_vm11  ;;  %vm764_vm14 = vcmp.eq.f32.partialorder %v1520_v63, %v761_v17 }
 0x76b   :  { %v778_v20 = vsel %vm1690_vm2, 1.0, %v1666_v60  ;;  %v781_v21 = vsel %vm1690_vm2, -1e+30, %v736_v61  ;;  %vm1700_vm5 = vmand %vm764_vm14, %vm767_vm1 }
 0x76c   :  { %v779_v24 = vsel %vm1700_vm5, 1.0, %v1668_v62  ;;  %v782_v27 = vsel %vm1700_vm5, -1e+30, %v737_v50  ;;  %v786_v30 = vsel %vm230_vm3, %v781_v21, -inf }
 0x76d   :  { %787 = vmax.xlane.f32.xlu1 %v786_v30  ;;  %v789_v31 = vsel %vm230_vm3, %v782_v27, -inf }
 0x76e   :  { %790 = vmax.xlane.f32.xlu0 %v789_v31 }
 0x7d8   :  { %v785_v25 = vpop.xlane.xlu2 %784 }
 0x7d9   :  { %vm792_vm6 = vcmp.eq.f32.partialorder %v780_v13, %v785_v25  ;;  %vm810_vm4 = vcmp.gt.f32.partialorder %v785_v25, -5e+29 }
 0x7da   :  { %v795_v29 = vsel %vm792_vm6, %v1520_v63, 1e+30 }
 0x7db   :  { %v798_v33 = vsel %vm230_vm3, %v795_v29, inf }
 0x7dc   :  { %799 = vmin.xlane.f32.xlu2 %v798_v33 }
 0x7e0   :  { %v788_v34 = vpop.xlane.xlu1 %787 }
 0x7e1   :  { %vm793_vm12 = vcmp.eq.f32.partialorder %v781_v21, %v788_v34  ;;  %v791_v37 = vpop.xlane.xlu0 %790  ;;  %vm811_vm11 = vcmp.gt.f32.partialorder %v788_v34, -5e+29 }
 0x7e2   :  { %vm794_vm15 = vcmp.eq.f32.partialorder %v782_v27, %v791_v37  ;;  %v796_v38 = vsel %vm793_vm12, %v1520_v63, 1e+30  ;;  %vm812_vm1 = vcmp.gt.f32.partialorder %v791_v37, -5e+29 }
 0x7e3   :  { %v801_v39 = vsel %vm230_vm3, %v796_v38, inf  ;;  %v797_v40 = vsel %vm794_vm15, %v1520_v63, 1e+30 }
 0x7e4   :  { %802 = vmin.xlane.f32.xlu1 %v801_v39  ;;  %v804_v41 = vsel %vm230_vm3, %v797_v40, inf }
 0x7e5   :  { %805 = vmin.xlane.f32.xlu0 %v804_v41 }
 0x84f   :  { %v800_v42 = vpop.xlane.xlu2 %799 }
 0x850   :  { %vm807_vm0 = vcmp.eq.f32.partialorder %v1520_v63, %v800_v42 }
 0x851   :  { %vm819_vm7 = vmand %vm807_vm0, %vm810_vm4 }
 0x852   :  { %v1718_v43 = vsel %vm819_vm7, 1.0, %v777_v11  ;;  %v825_v44 = vsel %vm819_vm7, -1e+30, %v780_v13 }
 0x853   :  { %v828_v45 = vsel %vm230_vm3, %v825_v44, -inf }
 0x854   :  { %829 = vmax.xlane.f32.xlu2 %v828_v45 }
 0x857   :  { %v803_v48 = vpop.xlane.xlu1 %802 }
 0x858   :  { %vm808_vm8 = vcmp.eq.f32.partialorder %v1520_v63, %v803_v48  ;;  %v806_v49 = vpop.xlane.xlu0 %805  ;;  %v227_v48 = vsel %vm1435_vm13, %v1449_v16, 1e+30 }
 0x859   :  { %vm820_vm2 = vmand %vm808_vm8, %vm811_vm11  ;;  %vm809_vm14 = vcmp.eq.f32.partialorder %v1520_v63, %v806_v49 }
 0x85a   :  { %v1723_v51 = vsel %vm820_vm2, 1.0, %v778_v20  ;;  %v826_v52 = vsel %vm820_vm2, -1e+30, %v781_v21  ;;  %vm821_vm5 = vmand %vm809_vm14, %vm812_vm1 }
 0x85b   :  { %v1725_v53 = vsel %vm821_vm5, 1.0, %v779_v24  ;;  %v827_v54 = vsel %vm821_vm5, -1e+30, %v782_v27  ;;  %v831_v55 = vsel %vm230_vm3, %v826_v52, -inf }
 0x85c   :  { %832 = vmax.xlane.f32.xlu1 %v831_v55  ;;  %v834_v47 = vsel %vm230_vm3, %v827_v54, -inf }
 0x85d   :  { %835 = vmax.xlane.f32.xlu0 %v834_v47 }
 0x8c7   :  { %v830_v56 = vpop.xlane.xlu2 %829 }
 0x8c8   :  { %vm837_vm6 = vcmp.eq.f32.partialorder %v825_v44, %v830_v56  ;;  %vm855_vm4 = vcmp.gt.f32.partialorder %v830_v56, -5e+29  ;;  %v229_v56 = vsel %vm1427_vm10, %v1469_v28, 1e+30 }
 0x8c9   :  { %v840_v7 = vsel %vm837_vm6, %v1520_v63, 1e+30 }
 0x8ca   :  { %v843_v57 = vsel %vm230_vm3, %v840_v7, inf  ;;  %v234_v7 = vsel %vm230_vm3, %v228_v46, inf }
 0x8cb   :  { %844 = vmin.xlane.f32.xlu2 %v843_v57  ;;  %v237_v57 = vsel %vm230_vm3, %v229_v56, inf }
 0x8cf   :  { %v833_v58 = vpop.xlane.xlu1 %832 }
 0x8d0   :  { %vm838_vm12 = vcmp.eq.f32.partialorder %v826_v52, %v833_v58  ;;  %v836_v59 = vpop.xlane.xlu0 %835  ;;  %vm856_vm11 = vcmp.gt.f32.partialorder %v833_v58, -5e+29 }
 0x8d1   :  { %vm839_vm15 = vcmp.eq.f32.partialorder %v827_v54, %v836_v59  ;;  %v841_v60 = vsel %vm838_vm12, %v1520_v63, 1e+30  ;;  %vm857_vm1 = vcmp.gt.f32.partialorder %v836_v59, -5e+29 }
 0x8d2   :  { %v846_v61 = vsel %vm230_vm3, %v841_v60, inf  ;;  %v842_v62 = vsel %vm839_vm15, %v1520_v63, 1e+30 }
 0x8d3   :  { %847 = vmin.xlane.f32.xlu1 %v846_v61  ;;  %v849_v50 = vsel %vm230_vm3, %v842_v62, inf }
 0x8d4   :  { %850 = vmin.xlane.f32.xlu0 %v849_v50 }
 0x93e   :  { %v845_v0 = vpop.xlane.xlu2 %844 }
 0x93f   :  { %vm852_vm0 = vcmp.eq.f32.partialorder %v1520_v63, %v845_v0 }
 0x940   :  { %vm1736_vm7 = vmand %vm852_vm0, %vm855_vm4 }
 0x941   :  { %v867_v23 = vsel %vm1736_vm7, 1.0, %v1718_v43  ;;  %v870_v2 = vsel %vm1736_vm7, -1e+30, %v825_v44 }
 0x942   :  { %v873_v3 = vsel %vm230_vm3, %v870_v2, -inf }
 0x943   :  { %874 = vmax.xlane.f32.xlu2 %v873_v3 }
 0x946   :  { %v848_v19 = vpop.xlane.xlu1 %847 }
 0x947   :  { %vm853_vm8 = vcmp.eq.f32.partialorder %v1520_v63, %v848_v19  ;;  %v851_v4 = vpop.xlane.xlu0 %850 }
 0x948   :  { %vm1747_vm2 = vmand %vm853_vm8, %vm856_vm11  ;;  %vm854_vm14 = vcmp.eq.f32.partialorder %v1520_v63, %v851_v4 }
 0x949   :  { %v868_v26 = vsel %vm1747_vm2, 1.0, %v1723_v51  ;;  %v871_v6 = vsel %vm1747_vm2, -1e+30, %v826_v52  ;;  %vm1757_vm5 = vmand %vm854_vm14, %vm857_vm1 }
 0x94a   :  { %v869_v9 = vsel %vm1757_vm5, 1.0, %v1725_v53  ;;  %v872_v10 = vsel %vm1757_vm5, -1e+30, %v827_v54  ;;  %v876_v11 = vsel %vm230_vm3, %v871_v6, -inf  ;;  %v231_v54 = vsel %vm230_vm3, %v227_v48, inf }
 0x94b   :  { %877 = vmax.xlane.f32.xlu1 %v876_v11  ;;  %v879_v13 = vsel %vm230_vm3, %v872_v10, -inf }
 0x94c   :  { %880 = vmax.xlane.f32.xlu0 %v879_v13 }
 0x9b6   :  { %v875_v14 = vpop.xlane.xlu2 %874 }
 0x9b7   :  { %vm882_vm6 = vcmp.eq.f32.partialorder %v870_v2, %v875_v14  ;;  %vm900_vm4 = vcmp.gt.f32.partialorder %v875_v14, -5e+29 }
 0x9b8   :  { %v885_v15 = vsel %vm882_vm6, %v1520_v63, 1e+30 }
 0x9b9   :  { %v888_v17 = vsel %vm230_vm3, %v885_v15, inf }
 0x9ba   :  { %889 = vmin.xlane.f32.xlu2 %v888_v17 }
 0x9be   :  { %v878_v18 = vpop.xlane.xlu1 %877 }
 0x9bf   :  { %vm883_vm12 = vcmp.eq.f32.partialorder %v871_v6, %v878_v18  ;;  %v881_v20 = vpop.xlane.xlu0 %880  ;;  %vm901_vm11 = vcmp.gt.f32.partialorder %v878_v18, -5e+29 }
 0x9c0   :  { %vm884_vm15 = vcmp.eq.f32.partialorder %v872_v10, %v881_v20  ;;  %v886_v21 = vsel %vm883_vm12, %v1520_v63, 1e+30  ;;  %vm902_vm1 = vcmp.gt.f32.partialorder %v881_v20, -5e+29 }
 0x9c1   :  { %v891_v22 = vsel %vm230_vm3, %v886_v21, inf  ;;  %v887_v24 = vsel %vm884_vm15, %v1520_v63, 1e+30 }
 0x9c2   :  { %892 = vmin.xlane.f32.xlu1 %v891_v22  ;;  %v894_v27 = vsel %vm230_vm3, %v887_v24, inf }
 0x9c3   :  { %895 = vmin.xlane.f32.xlu0 %v894_v27 }
 0xa2d   :  { %v890_v30 = vpop.xlane.xlu2 %889 }
 0xa2e   :  { %vm897_vm0 = vcmp.eq.f32.partialorder %v1520_v63, %v890_v30 }
 0xa2f   :  { %vm909_vm7 = vmand %vm897_vm0, %vm900_vm4 }
 0xa30   :  { %v1775_v31 = vsel %vm909_vm7, 1.0, %v867_v23  ;;  %v1777_v25 = vsel %vm909_vm7, -1e+30, %v870_v2 }
 0xa31   :  { %v918_v29 = vsel %vm230_vm3, %v1777_v25, -inf }
 0xa32   :  { %919 = vmax.xlane.f32.xlu2 %v918_v29 }
 0xa35   :  { %v893_v33 = vpop.xlane.xlu1 %892 }
 0xa36   :  { %vm898_vm8 = vcmp.eq.f32.partialorder %v1520_v63, %v893_v33  ;;  %v896_v34 = vpop.xlane.xlu0 %895 }
 0xa37   :  { %vm910_vm2 = vmand %vm898_vm8, %vm901_vm11  ;;  %vm899_vm14 = vcmp.eq.f32.partialorder %v1520_v63, %v896_v34 }
 0xa38   :  { %v1783_v37 = vsel %vm910_vm2, 1.0, %v868_v26  ;;  %v1785_v38 = vsel %vm910_vm2, -1e+30, %v871_v6  ;;  %vm911_vm5 = vmand %vm899_vm14, %vm902_vm1 }
 0xa39   :  { %v1787_v39 = vsel %vm911_vm5, 1.0, %v869_v9  ;;  %v1789_v40 = vsel %vm911_vm5, -1e+30, %v872_v10  ;;  %v921_v41 = vsel %vm230_vm3, %v1785_v38, -inf }
 0xa3a   :  { %922 = vmax.xlane.f32.xlu1 %v921_v41  ;;  %v924_v42 = vsel %vm230_vm3, %v1789_v40, -inf }
 0xa3b   :  { %925 = vmax.xlane.f32.xlu0 %v924_v42 }
 0xaa5   :  { %v920_v43 = vpop.xlane.xlu2 %919 }
 0xaa6   :  { %vm927_vm6 = vcmp.eq.f32.partialorder %v1777_v25, %v920_v43  ;;  %vm945_vm13 = vcmp.gt.f32.partialorder %v920_v43, -5e+29 }
 0xaa7   :  { %v930_v44 = vsel %vm927_vm6, %v1520_v63, 1e+30 }
 0xaa8   :  { %v933_v45 = vsel %vm230_vm3, %v930_v44, inf }
 0xaa9   :  { %934 = vmin.xlane.f32.xlu2 %v933_v45 }
 0xaad   :  { %v923_v49 = vpop.xlane.xlu1 %922 }
 0xaae   :  { %vm928_vm12 = vcmp.eq.f32.partialorder %v1785_v38, %v923_v49  ;;  %v926_v51 = vpop.xlane.xlu0 %925  ;;  %vm946_vm9 = vcmp.gt.f32.partialorder %v923_v49, -5e+29 }
 0xaaf   :  { %vm929_vm15 = vcmp.eq.f32.partialorder %v1789_v40, %v926_v51  ;;  %v931_v52 = vsel %vm928_vm12, %v1520_v63, 1e+30  ;;  %vm947_vm11 = vcmp.gt.f32.partialorder %v926_v51, -5e+29 }
 0xab0   :  { %v936_v53 = vsel %vm230_vm3, %v931_v52, inf  ;;  %v932_v55 = vsel %vm929_vm15, %v1520_v63, 1e+30 }
 0xab1   :  { %937 = vmin.xlane.f32.xlu1 %v936_v53  ;;  %232 = vmin.xlane.f32.xlu2 %v231_v54  ;;  %v939_v47 = vsel %vm230_vm3, %v932_v55, inf }
 0xab2   :  { %940 = vmin.xlane.f32.xlu0 %v939_v47 }
 0xab9   :  { %235 = vmin.xlane.f32.xlu1 %v234_v7 }
 0xaba   :  { %238 = vmin.xlane.f32.xlu0 %v237_v57 }
 0xb1c   :  { %v935_v58 = vpop.xlane.xlu2 %934 }
 0xb1d   :  { %vm942_vm4 = vcmp.eq.f32.partialorder %v1520_v63, %v935_v58 }
 0xb1e   :  { %vm1817_vm0 = vmand %vm942_vm4, %vm945_vm13 }
 0xb1f   :  { %v957_v35 = vsel %vm1817_vm0, 1.0, %v1775_v31  ;;  %v1850_v19 = vsel %vm1817_vm0, -1e+30, %v1777_v25 }
 0xb20   :  { %v963_v8 = vsel %vm230_vm3, %v1850_v19, -inf }
 0xb24   :  { %v938_v36 = vpop.xlane.xlu1 %937  ;;  %v1824_v60 = vpop.xlane.xlu2 %232 }
 0xb25   :  { %vm943_vm10 = vcmp.eq.f32.partialorder %v1520_v63, %v938_v36  ;;  %vm240_vm7 = vcmp.eq.f32.partialorder %v227_v48, %v1824_v60  ;;  %v941_v61 = vpop.xlane.xlu0 %940 }
 0xb26   :  { %vm1828_vm8 = vmand %vm943_vm10, %vm946_vm9  ;;  %vm944_vm1 = vcmp.eq.f32.partialorder %v1520_v63, %v941_v61  ;;  %v243_v50 = vsel %vm240_vm7, %v1520_v63, 1e+30 }
 0xb27   :  { %v958_v0 = vsel %vm1828_vm8, 1.0, %v1783_v37  ;;  %vm1837_vm2 = vmand %vm944_vm1, %vm947_vm11  ;;  %v246_v2 = vsel %vm230_vm3, %v243_v50, inf  ;;  %v1865_v10 = vsel %vm1828_vm8, -1e+30, %v1785_v38 }
 0xb28   :  { %v959_v23 = vsel %vm1837_vm2, 1.0, %v1787_v39  ;;  %247 = vmin.xlane.f32.xlu2 %v246_v2  ;;  %v1870_v11 = vsel %vm1837_vm2, -1e+30, %v1789_v40  ;;  %v966_v13 = vsel %vm230_vm3, %v1865_v10, -inf }
 0xb29   :  { %v969_v14 = vsel %vm230_vm3, %v1870_v11, -inf }
 0xb2c   :  { %v1845_v3 = vpop.xlane.xlu1 %235 }
 0xb2d   :  { %vm241_vm14 = vcmp.eq.f32.partialorder %v228_v46, %v1845_v3  ;;  %v1853_v4 = vpop.xlane.xlu0 %238 }
 0xb2e   :  { %vm242_vm5 = vcmp.eq.f32.partialorder %v229_v56, %v1853_v4  ;;  %v244_v5 = vsel %vm241_vm14, %v1520_v63, 1e+30 }
 0xb2f   :  { %v249_v26 = vsel %vm230_vm3, %v244_v5, inf  ;;  %v245_v6 = vsel %vm242_vm5, %v1520_v63, 1e+30 }
 0xb30   :  { %250 = vmin.xlane.f32.xlu1 %v249_v26  ;;  %v252_v9 = vsel %vm230_vm3, %v245_v6, inf  ;;  %964 = vmax.xlane.f32.xlu2 %v963_v8 }
 0xb31   :  { %253 = vmin.xlane.f32.xlu0 %v252_v9 }
 0xb38   :  { %967 = vmax.xlane.f32.xlu1 %v966_v13 }
 0xb39   :  { %970 = vmax.xlane.f32.xlu0 %v969_v14 }
 0xb9b   :  { %v248_v15 = vpop.xlane.xlu2 %247 }
 0xb9c   :  { %vm255_vm6 = vcmp.eq.f32.partialorder %v1520_v63, %v248_v15 }
 0xb9d   :  { %v1877_v17 = vsel %vm255_vm6, 1e+30, %v227_v48 }
 0xb9e   :  { %v261_v18 = vsel %vm230_vm3, %v1877_v17, inf }
 0xb9f   :  { %262 = vmin.xlane.f32.xlu2 %v261_v18 }
 0xba3   :  { %v251_v20 = vpop.xlane.xlu1 %250  ;;  %v965_v21 = vpop.xlane.xlu2 %964 }
 0xba4   :  { %vm256_vm12 = vcmp.eq.f32.partialorder %v1520_v63, %v251_v20  ;;  %v254_v22 = vpop.xlane.xlu0 %253  ;;  %vm972_vm15 = vcmp.eq.f32.partialorder %v1850_v19, %v965_v21  ;;  %vm990_vm11 = vcmp.gt.f32.partialorder %v965_v21, -5e+29  ;;  %v1076_v20 = vsub.f32 1.0, %v1469_v28 }
 0xba5   :  { %v1882_v24 = vsel %vm256_vm12, 1e+30, %v228_v46  ;;  %vm257_vm13 = vcmp.eq.f32.partialorder %v1520_v63, %v254_v22  ;;  %v975_v25 = vsel %vm972_vm15, %v1520_v63, 1e+30 }
 0xba6   :  { %v1886_v27 = vsel %vm257_vm13, 1e+30, %v229_v56  ;;  %v264_v30 = vsel %vm230_vm3, %v1882_v24, inf  ;;  %v978_v29 = vsel %vm230_vm3, %v975_v25, inf  ;;  %v1974_v22 = vmul.f32 50.0, %v1076_v20 }
 0xba7   :  { %265 = vmin.xlane.f32.xlu1 %v264_v30  ;;  %v267_v33 = vsel %vm230_vm3, %v1886_v27, inf  ;;  %979 = vmin.xlane.f32.xlu2 %v978_v29  ;;  %v1075_v30 = vsub.f32 1.0, %v1474_v32 }
 0xba8   :  { %268 = vmin.xlane.f32.xlu0 %v267_v33  ;;  %v1085_v29 = vand.u32 2147483647, %v1974_v22 }
 0xbab   :  { %v968_v34 = vpop.xlane.xlu1 %967 }
 0xbac   :  { %vm973_vm4 = vcmp.eq.f32.partialorder %v1865_v10, %v968_v34  ;;  %v971_v38 = vpop.xlane.xlu0 %970  ;;  %vm991_vm6 = vcmp.gt.f32.partialorder %v968_v34, -5e+29 }
 0xbad   :  { %vm974_vm9 = vcmp.eq.f32.partialorder %v1870_v11, %v971_v38  ;;  %v976_v40 = vsel %vm973_vm4, %v1520_v63, 1e+30  ;;  %vm992_vm0 = vcmp.gt.f32.partialorder %v971_v38, -5e+29  ;;  %v1985_v38 = vmul.f32 50.0, %v1075_v30 }
 0xbae   :  { %v981_v41 = vsel %vm230_vm3, %v976_v40, inf  ;;  %v977_v42 = vsel %vm974_vm9, %v1520_v63, 1e+30 }
 0xbaf   :  { %982 = vmin.xlane.f32.xlu1 %v981_v41  ;;  %v984_v43 = vsel %vm230_vm3, %v977_v42, inf  ;;  %v1088_v41 = vsub.f32 0.0, %v1085_v29  ;;  %v1989_v42 = vadd.f32 -0.95, %v1845_v3 }
 0xbb0   :  { %985 = vmin.xlane.f32.xlu0 %v984_v43  ;;  %v1084_v43 = vand.u32 2147483647, %v1985_v38 }
 0xbb2   :  { %v1087_v3 = vsub.f32 0.0, %v1084_v43 }
 0xc12   :  { %v1900_v44 = vpop.xlane.xlu2 %262 }
 0xc13   :  { %vm270_vm10 = vcmp.eq.f32.partialorder %v1877_v17, %v1900_v44  ;;  %v1981_v25 = vadd.f32 -1.05, %v1900_v44  ;;  %v1993_v44 = vadd.f32 -0.95, %v1853_v4 }
 0xc14   :  { %v273_v45 = vsel %vm270_vm10, %v1520_v63, 1e+30 }
 0xc15   :  { %v276_v48 = vsel %vm230_vm3, %v273_v45, inf  ;;  %v339_v40 = vand.u32 2147483647, %v1981_v25 }
 0xc16   :  { %277 = vmin.xlane.f32.xlu2 %v276_v48  ;;  %v1093_v48 = vmul.f32 1.442695, %v1088_v41 }
 0xc17   :  { %v342_v45 = vsub.f32 0.0, %v339_v40 }
 0xc1a   :  { %v1906_v49 = vpop.xlane.xlu1 %265  ;;  %v980_v51 = vpop.xlane.xlu2 %979 }
 0xc1b   :  { %vm271_vm7 = vcmp.eq.f32.partialorder %v1882_v24, %v1906_v49  ;;  %v1910_v52 = vpop.xlane.xlu0 %268  ;;  %vm987_vm1 = vcmp.eq.f32.partialorder %v1520_v63, %v980_v51  ;;  %v307_v51 = vand.u32 2147483647, %v1989_v42 }
 0xc1c   :  { %vm272_vm14 = vcmp.eq.f32.partialorder %v1886_v27, %v1910_v52  ;;  %vm999_vm5 = vmand %vm987_vm1, %vm990_vm11  ;;  %v274_v53 = vsel %vm271_vm7, %v1520_v63, 1e+30 }
 0xc1d   :  { %v1920_v54 = vsel %vm999_vm5, 1.0, %v957_v35  ;;  %v279_v55 = vsel %vm230_vm3, %v274_v53, inf  ;;  %v275_v47 = vsel %vm272_vm14, %v1520_v63, 1e+30  ;;  %v1005_v46 = vsel %vm999_vm5, -1e+30, %v1850_v19 }
 0xc1e   :  { %280 = vmin.xlane.f32.xlu1 %v279_v55  ;;  %v282_v56 = vsel %vm230_vm3, %v275_v47, inf  ;;  %v1008_v7 = vsel %vm230_vm3, %v1005_v46, -inf  ;;  %v1997_v53 = vadd.f32 -1.05, %v1906_v49  ;;  %v2000_v47 = vadd.f32 -1.05, %v1910_v52 }
 0xc1f   :  { %283 = vmin.xlane.f32.xlu0 %v282_v56  ;;  %1009 = vmax.xlane.f32.xlu2 %v1008_v7  ;;  %v345_v56 = vmul.f32 1.442695, %v342_v45 }
 0xc20   :  { %v340_v4 = vand.u32 2147483647, %v1997_v53 }
 0xc22   :  { %v983_v57 = vpop.xlane.xlu1 %982  ;;  %v343_v52 = vsub.f32 0.0, %v340_v4 }
 0xc23   :  { %vm988_vm12 = vcmp.eq.f32.partialorder %v1520_v63, %v983_v57  ;;  %v986_v31 = vpop.xlane.xlu0 %985  ;;  %v310_v57 = vsub.f32 0.0, %v307_v51 }
 0xc24   :  { %vm1000_vm15 = vmand %vm988_vm12, %vm991_vm6  ;;  %vm989_vm13 = vcmp.eq.f32.partialorder %v1520_v63, %v986_v31  ;;  %v341_v31 = vand.u32 2147483647, %v2000_v47 }
 0xc25   :  { %v1933_v58 = vsel %vm1000_vm15, 1.0, %v958_v0  ;;  %vm1001_vm4 = vmand %vm989_vm13, %vm992_vm0  ;;  %v1006_v59 = vsel %vm1000_vm15, -1e+30, %v1865_v10 }
 0xc26   :  { %v1940_v35 = vsel %vm1001_vm4, 1.0, %v959_v23  ;;  %v1011_v36 = vsel %vm230_vm3, %v1006_v59, -inf  ;;  %v1007_v61 = vsel %vm1001_vm4, -1e+30, %v1870_v11 }
 0xc27   :  { %1012 = vmax.xlane.f32.xlu1 %v1011_v36  ;;  %v1014_v62 = vsel %vm230_vm3, %v1007_v61, -inf }
 0xc28   :  { %1015 = vmax.xlane.f32.xlu0 %v1014_v62 }
 0xc89   :  { %v278_v37 = vpop.xlane.xlu2 %277 }
 0xc8a   :  { %vm285_vm8 = vcmp.eq.f32.partialorder %v1520_v63, %v278_v37  ;;  %v344_v37 = vsub.f32 0.0, %v341_v31 }
 0xc8b   :  { %v288_v50 = vsel %vm285_vm8, 1e+30, %v1877_v17  ;;  %v1074_v17 = vsub.f32 1.0, %v1449_v16 }
 0xc8c   :  { %v291_v0 = vsel %vm230_vm3, %v288_v50, inf }
 0xc8d   :  { %292 = vmin.xlane.f32.xlu2 %v291_v0  ;;  %v1970_v18 = vmul.f32 50.0, %v1074_v17 }
 0xc8f   :  { %v1083_v21 = vand.u32 2147483647, %v1970_v18 }
 0xc91   :  { %v281_v1 = vpop.xlane.xlu1 %280 }
 0xc92   :  { %vm286_vm2 = vcmp.eq.f32.partialorder %v1520_v63, %v281_v1  ;;  %v284_v39 = vpop.xlane.xlu0 %283  ;;  %v1949_v23 = vpop.xlane.xlu2 %1009 }
 0xc93   :  { %v289_v2 = vsel %vm286_vm2, 1e+30, %v1882_v24  ;;  %vm287_vm9 = vcmp.eq.f32.partialorder %v1520_v63, %v284_v39  ;;  %vm1017_vm10 = vcmp.eq.f32.partialorder %v1005_v46, %v1949_v23  ;;  %v1977_v24 = vadd.f32 -0.95, %v1824_v60 }
 0xc94   :  { %v294_v19 = vsel %vm230_vm3, %v289_v2, inf  ;;  %v290_v5 = vsel %vm287_vm9, 1e+30, %v1886_v27  ;;  %v1020_v26 = vsel %vm1017_vm10, %v1520_v63, 1e+30  ;;  %v1086_v27 = vsub.f32 0.0, %v1083_v21 }
 0xc95   :  { %295 = vmin.xlane.f32.xlu1 %v294_v19  ;;  %v297_v6 = vsel %vm230_vm3, %v290_v5, inf  ;;  %v1023_v8 = vsel %vm230_vm3, %v1020_v26, inf  ;;  %v306_v33 = vand.u32 2147483647, %v1977_v24  ;;  %v308_v46 = vand.u32 2147483647, %v1993_v44 }
 0xc96   :  { %298 = vmin.xlane.f32.xlu0 %v297_v6  ;;  %1024 = vmin.xlane.f32.xlu2 %v1023_v8  ;;  %v1089_v34 = vmul.f32 1.442695, %v1086_v27  ;;  %v347_v2 = vmul.f32 1.442695, %v343_v52  ;;  %v349_v19 = vmul.f32 1.442695, %v344_v37 }
 0xc97   :  { %v309_v60 = vsub.f32 0.0, %v306_v33  ;;  %v311_v36 = vsub.f32 0.0, %v308_v46  ;;  %vm1035_vm14 = vcmp.gt.f32.partialorder %v1949_v23, -5e+29 }
 0xc98   :  { %1219 = vpow2.f32 %v1089_v34 }
 0xc99   :  { %v312_v55 = vmul.f32 1.442695, %v309_v60  ;;  %1221 = vpow2.f32 %v1093_v48  ;;  %v316_v50 = vmul.f32 1.442695, %v311_v36  ;;  %v1080_v60 = vmax.f32 %v1970_v18, 0.0 }
 0xc9a   :  { %v1959_v9 = vpop.xlane.xlu1 %1012 }
 0xc9b   :  { %vm1018_vm7 = vcmp.eq.f32.partialorder %v1006_v59, %v1959_v9  ;;  %v1962_v10 = vpop.xlane.xlu0 %1015  ;;  %1223 = vpow2.f32 %v312_v55  ;;  %v1091_v59 = vmul.f32 1.442695, %v1087_v3  ;;  %vm1036_vm12 = vcmp.gt.f32.partialorder %v1959_v9, -5e+29 }
 0xc9c   :  { %v1021_v11 = vsel %vm1018_vm7, %v1520_v63, 1e+30  ;;  %vm1019_vm11 = vcmp.eq.f32.partialorder %v1007_v61, %v1962_v10  ;;  %1225 = vpow2.f32 %v345_v56  ;;  %v314_v61 = vmul.f32 1.442695, %v310_v57 }
 0xc9d   :  { %v1026_v13 = vsel %vm230_vm3, %v1021_v11, inf  ;;  %v1022_v14 = vsel %vm1019_vm11, %v1520_v63, 1e+30  ;;  %1227 = vpow2.f32 %v1091_v59  ;;  %vm1037_vm13 = vcmp.gt.f32.partialorder %v1962_v10, -5e+29 }
 0xc9e   :  { %1027 = vmin.xlane.f32.xlu1 %v1026_v13  ;;  %v1029_v15 = vsel %vm230_vm3, %v1022_v14, inf  ;;  %v1220_v7 = vpop.eup %1219 }
 0xc9f   :  { %1030 = vmin.xlane.f32.xlu0 %v1029_v15  ;;  %v1095_v49 = vadd.f32 1.0, %v1220_v7  ;;  %v1222_v62 = vpop.eup %1221 }
 0xca0   :  { %v1097_v1 = vadd.f32 1.0, %v1222_v62 }
 0xca1   :  { %1229 = vlog2.f32 %v1095_v49  ;;  %v1224_v0 = vpop.eup %1223 }
 0xca2   :  { %1231 = vpow2.f32 %v314_v61  ;;  %v1226_v39 = vpop.eup %1225  ;;  %v318_v5 = vadd.f32 1.0, %v1224_v0 }
 0xca3   :  { %1233 = vpow2.f32 %v316_v50  ;;  %v1228_v6 = vpop.eup %1227  ;;  %v351_v8 = vadd.f32 1.0, %v1226_v39 }
 0xca4   :  { %1235 = vlog2.f32 %v1097_v1  ;;  %v1096_v17 = vadd.f32 1.0, %v1228_v6 }
 0xca5   :  { %1237 = vpow2.f32 %v347_v2 }
 0xca6   :  { %1239 = vpow2.f32 %v349_v19 }
 0xca7   :  { %v1230_v13 = vpop.eup %1229  ;;  %1241 = vlog2.f32 %v318_v5 }
 0xca8   :  { %v1232_v14 = vpop.eup %1231  ;;  %1243 = vlog2.f32 %v351_v8  ;;  %v1099_v30 = vmul.f32 0.6931472, %v1230_v13 }
 0xca9   :  { %v1234_v21 = vpop.eup %1233  ;;  %v319_v27 = vadd.f32 1.0, %v1232_v14  ;;  %1245 = vlog2.f32 %v1096_v17  ;;  %v1082_v17 = vmax.f32 %v1974_v22, 0.0 }
 0xcaa   :  { %v1236_v29 = vpop.eup %1235  ;;  %v320_v45 = vadd.f32 1.0, %v1234_v21  ;;  %v1104_v46 = vadd.f32 %v1099_v30, %v1080_v60  ;;  %v303_v21 = vmax.f32 %v1977_v24, 0.0 }
 0xcab   :  { %v1238_v40 = vpop.eup %1237  ;;  %v2011_v56 = vmul.f32 0.6931472, %v1236_v29 }
 0xcac   :  { %v1240_v43 = vpop.eup %1239  ;;  %v352_v57 = vadd.f32 1.0, %v1238_v40 }
 0xcad   :  { %v1242_v51 = vpop.eup %1241  ;;  %v353_v31 = vadd.f32 1.0, %v1240_v43  ;;  %v1106_v22 = vadd.f32 %v2011_v56, %v1082_v17 }
 0xcae   :  { %v1244_v7 = vpop.eup %1243  ;;  %v322_v36 = vmul.f32 0.6931472, %v1242_v51 }
 0xcaf   :  { %v1246_v62 = vpop.eup %1245  ;;  %v355_v52 = vmul.f32 0.6931472, %v1244_v7 }
 0xcb0   :  { %v1101_v10 = vmul.f32 0.6931472, %v1246_v62  ;;  %v327_v40 = vadd.f32 %v322_v36, %v303_v21 }
 0xcb2   :  { %v330_v56 = vmul.f32 0.25, %v327_v40 }
 0xd00   :  { %v293_v26 = vpop.xlane.xlu2 %292 }
 0xd01   :  { %v2005_v11 = vadd.f32 -1.12, %v293_v26  ;;  %v1050_v34 = vadd.f32 0.05, %v293_v26 }
 0xd03   :  { %v375_v15 = vand.u32 2147483647, %v2005_v11  ;;  %vm1053_vm1 = vcmp.lt.f32.partialorder %v1449_v16, %v1050_v34  ;;  %v336_v16 = vmax.f32 %v1981_v25, 0.0  ;;  %v372_v51 = vmax.f32 %v2005_v11, 0.0 }
 0xd04   :  { %v1185_v0 = vsel %vm1053_vm1, 1.0, %v1331_v12 }
 0xd05   :  { %v378_v20 = vsub.f32 0.0, %v375_v15  ;;  %v360_v15 = vadd.f32 %v355_v52, %v336_v16 }
 0xd07   :  { %v381_v33 = vmul.f32 1.442695, %v378_v20  ;;  %v363_v24 = vmul.f32 0.125, %v360_v15 }
 0xd08   :  { %v296_v41 = vpop.xlane.xlu1 %295 }
 0xd09   :  { %1247 = vpow2.f32 %v381_v33  ;;  %v2009_v48 = vadd.f32 -1.12, %v296_v41  ;;  %v299_v55 = vpop.xlane.xlu0 %298  ;;  %v1025_v3 = vpop.xlane.xlu2 %1024  ;;  %v1051_v59 = vadd.f32 0.05, %v296_v41  ;;  %v1081_v33 = vmax.f32 %v1985_v38, 0.0 }
 0xd0a   :  { %1249 = vlog2.f32 %v319_v27  ;;  %v2015_v18 = vadd.f32 -1.12, %v299_v55  ;;  %vm1032_vm5 = vcmp.eq.f32.partialorder %v1520_v63, %v1025_v3  ;;  %v1052_v37 = vadd.f32 0.05, %v299_v55 }
 0xd0b   :  { %v376_v4 = vand.u32 2147483647, %v2009_v48  ;;  %1251 = vlog2.f32 %v320_v45  ;;  %vm1044_vm6 = vmand %vm1032_vm5, %vm1035_vm14  ;;  %vm1054_vm0 = vcmp.lt.f32.partialorder %v1474_v32, %v1051_v59  ;;  %v1105_v43 = vadd.f32 %v1101_v10, %v1081_v33 }
 0xd0c   :  { %v377_v61 = vand.u32 2147483647, %v2015_v18  ;;  %v1047_v50 = vsel %vm1044_vm6, 1.0, %v1920_v54  ;;  %1253 = vlog2.f32 %v352_v57  ;;  %vm1055_vm4 = vcmp.lt.f32.partialorder %v1469_v28, %v1052_v37 }
 0xd0d   :  { %v379_v49 = vsub.f32 0.0, %v376_v4  ;;  %v1062_v2 = vmul.f32 %v1185_v0, %v1047_v50  ;;  %1255 = vlog2.f32 %v353_v31  ;;  %v1186_v14 = vsel %vm1054_vm0, 1.0, %v1331_v12 }
 0xd0e   :  { %v380_v39 = vsub.f32 0.0, %v377_v61  ;;  %v337_v57 = vmax.f32 %v1997_v53, 0.0  ;;  %v304_v59 = vmax.f32 %v1989_v42, 0.0  ;;  %v338_v61 = vmax.f32 %v2000_v47, 0.0 }
 0xd0f   :  { %v1248_v1 = vpop.eup %1247  ;;  %v383_v23 = vmul.f32 1.442695, %v379_v49  ;;  %v1065_v54 = vsel %vm230_vm3, %v1062_v2, 0.0  ;;  %v1107_v30 = vmul.f32 %v1104_v46, %v1062_v2  ;;  %v366_v52 = vadd.f32 %v363_v24, %v330_v56 }
 0xd10   :  { %v1250_v19 = vpop.eup %1249  ;;  %v387_v5 = vadd.f32 1.0, %v1248_v1  ;;  %v385_v6 = vmul.f32 1.442695, %v380_v39  ;;  %1066 = vadd.xlane.f32.xlu2 %v1065_v54  ;;  %v305_v0 = vmax.f32 %v1993_v44, 0.0  ;;  %v374_v16 = vmax.f32 %v2015_v18, 0.0 }
 0xd11   :  { %v1028_v26 = vpop.xlane.xlu1 %1027  ;;  %1257 = vpow2.f32 %v383_v23  ;;  %v1252_v8 = vpop.eup %1251  ;;  %v1110_v3 = vsel %vm230_vm3, %v1107_v30, 0.0  ;;  %v324_v38 = vmul.f32 0.6931472, %v1250_v19  ;;  %v373_v19 = vmax.f32 %v2009_v48, 0.0 }
 0xd12   :  { %vm1033_vm15 = vcmp.eq.f32.partialorder %v1520_v63, %v1028_v26  ;;  %1259 = vlog2.f32 %v387_v5  ;;  %v1031_v9 = vpop.xlane.xlu0 %1030  ;;  %v1254_v20 = vpop.eup %1253  ;;  %v326_v36 = vmul.f32 0.6931472, %v1252_v8 }
 0xd13   :  { %vm1045_vm8 = vmand %vm1033_vm15, %vm1036_vm12  ;;  %1261 = vpow2.f32 %v385_v6  ;;  %vm1034_vm2 = vcmp.eq.f32.partialorder %v1520_v63, %v1031_v9  ;;  %v1187_v63 = vsel %vm1055_vm4, 1.0, %v1331_v12  ;;  %v357_v28 = vmul.f32 0.6931472, %v1254_v20 }
 0xd14   :  { %v1048_v13 = vsel %vm1045_vm8, 1.0, %v1933_v58  ;;  %vm1046_vm9 = vmand %vm1034_vm2, %vm1037_vm13  ;;  %v1256_v58 = vpop.eup %1255  ;;  %v328_v37 = vadd.f32 %v324_v38, %v304_v59  ;;  %v329_v42 = vadd.f32 %v326_v36, %v305_v0 }
 0xd15   :  { %v1063_v25 = vmul.f32 %v1186_v14, %v1048_v13  ;;  %v1049_v27 = vsel %vm1046_vm9, 1.0, %v1940_v35  ;;  %v359_v4 = vmul.f32 0.6931472, %v1256_v58  ;;  %v361_v11 = vadd.f32 %v357_v28, %v337_v57 }
 0xd16   :  { %v1064_v29 = vmul.f32 %v1187_v63, %v1049_v27  ;;  %v331_v26 = vmul.f32 0.25, %v328_v37  ;;  %v332_v44 = vmul.f32 0.25, %v329_v42 }
 0xd17   :  { %v1068_v32 = vsel %vm230_vm3, %v1063_v25, 0.0  ;;  %v1258_v34 = vpop.eup %1257  ;;  %v1108_v7 = vmul.f32 %v1105_v43, %v1063_v25  ;;  %v362_v1 = vadd.f32 %v359_v4, %v338_v61  ;;  %v364_v2 = vmul.f32 0.125, %v361_v11 }
 0xd18   :  { %1069 = vadd.xlane.f32.xlu1 %v1068_v32  ;;  %v1260_v41 = vpop.eup %1259  ;;  %v388_v60 = vadd.f32 1.0, %v1258_v34  ;;  %v1071_v35 = vsel %vm230_vm3, %v1064_v29, 0.0  ;;  %1111 = vadd.xlane.f32.xlu2 %v1110_v3  ;;  %v1109_v49 = vmul.f32 %v1106_v22, %v1064_v29 }
 0xd19   :  { %v1262_v45 = vpop.eup %1261  ;;  %v391_v55 = vmul.f32 0.6931472, %v1260_v41  ;;  %1072 = vadd.xlane.f32.xlu0 %v1071_v35  ;;  %v1113_v50 = vsel %vm230_vm3, %v1108_v7, 0.0  ;;  %v365_v6 = vmul.f32 0.125, %v362_v1  ;;  %v367_v14 = vadd.f32 %v364_v2, %v331_v26 }
 0xd1a   :  { %1263 = vlog2.f32 %v388_v60  ;;  %v389_v46 = vadd.f32 1.0, %v1262_v45  ;;  %v1116_v39 = vsel %vm230_vm3, %v1109_v49, 0.0  ;;  %vm1146_vm3 = vcmask 7168  }
 0xd1b   :  { %v396_v31 = vadd.f32 %v391_v55, %v372_v51  ;;  %v368_v10 = vadd.f32 %v365_v6, %v332_v44 }
 0xd1c   :  { %1265 = vlog2.f32 %v389_v46 }
 0xd1d   :  { %v399_v62 = vmul.f32 0.0625, %v396_v31 }
 0xd1f   :  { %v402_v53 = vadd.f32 %v399_v62, %v366_v52 }
 0xd20   :  { %1114 = vadd.xlane.f32.xlu1 %v1113_v50  ;;  %v1264_v23 = vpop.eup %1263 }
 0xd21   :  { %v393_v5 = vmul.f32 0.6931472, %v1264_v23  ;;  %1117 = vadd.xlane.f32.xlu0 %v1116_v39  ;;  %v405_v40 = vmul.f32 0.33333334, %v402_v53 }
 0xd22   :  { %v1266_v47 = vpop.eup %1265 }
 0xd23   :  { %v397_v54 = vadd.f32 %v393_v5, %v373_v19  ;;  %v395_v9 = vmul.f32 0.6931472, %v1266_v47 }
 0xd25   :  { %v400_v8 = vmul.f32 0.0625, %v397_v54  ;;  %v398_v13 = vadd.f32 %v395_v9, %v374_v16 }
 0xd27   :  { %v401_v15 = vmul.f32 0.0625, %v398_v13  ;;  %v403_v25 = vadd.f32 %v400_v8, %v367_v14 }
 0xd29   :  { %v404_v17 = vadd.f32 %v401_v15, %v368_v10  ;;  %v406_v51 = vmul.f32 0.33333334, %v403_v25 }
 0xd2b   :  { %v407_v38 = vmul.f32 0.33333334, %v404_v17 }
 0xd83   :  { %v1067_v20 = vpop.xlane.xlu2 %1066 }
 0xd84   :  { %v1119_v48 = vmax.f32 %v1067_v20, 1.0  ;;  %vm1131_vm10 = vcmp.gt.f32.partialorder %v1067_v20, 0.0 }
 0xd85   :  { %v1188_v21 = vsel %vm1131_vm10, 1.0, %v1331_v12 }
 0xd86   :  { %1267 = vrcp.f32 %v1119_v48  ;;  %1150 = vst.msk [vmem:[%s2090_s7] sm:$0xff] %vm1146_vm3, %v1188_v21 }
 0xd8b   :  { %v1070_v18 = vpop.xlane.xlu1 %1069  ;;  %v1112_v58 = vpop.xlane.xlu2 %1111 }
 0xd8c   :  { %v1120_v27 = vmax.f32 %v1070_v18, 1.0  ;;  %vm1132_vm7 = vcmp.gt.f32.partialorder %v1070_v18, 0.0  ;;  %v1073_v63 = vpop.xlane.xlu0 %1072  ;;  %v1268_v29 = vpop.eup %1267  ;;  %v1125_v33 = vmul.f32 0.02, %v1112_v58 }
 0xd8d   :  { %v1189_v30 = vsel %vm1132_vm7, 1.0, %v1331_v12  ;;  %v1121_v32 = vmax.f32 %v1073_v63, 1.0  ;;  %vm1133_vm11 = vcmp.gt.f32.partialorder %v1073_v63, 0.0 }
 0xd8e   :  { %1269 = vrcp.f32 %v1120_v27  ;;  %1151 = vst.msk [vmem:[%s2090_s7 + $0x8] sm:$0xff] %vm1146_vm3, %v1189_v30  ;;  %v1190_v34 = vsel %vm1133_vm11, 1.0, %v1331_v12  ;;  %v1128_v22 = vmul.f32 %v1268_v29, %v1125_v33 }
 0xd8f   :  { %1271 = vrcp.f32 %v1121_v32  ;;  %1152 = vst.msk [vmem:[%s2090_s7 + $0x10] sm:$0xff] %vm1146_vm3, %v1190_v34 }
 0xd90   :  { %v1140_v41 = vadd.f32 %v1128_v22, %v405_v40 }
 0xd92   :  { %v1143_v43 = vmul.f32 %v1188_v21, %v1140_v41 }
 0xd93   :  { %v1115_v24 = vpop.xlane.xlu1 %1114 }
 0xd94   :  { %v1270_v60 = vpop.eup %1269  ;;  %v1126_v35 = vmul.f32 0.02, %v1115_v24  ;;  %v1118_v45 = vpop.xlane.xlu0 %1117  ;;  %1147 = vst.msk [vmem:[%s2089_s6] sm:$0xff] %vm1146_vm3, %v1143_v43 }
 0xd95   :  { %v1272_v28 = vpop.eup %1271  ;;  %v1127_v3 = vmul.f32 0.02, %v1118_v45 }
 0xd96   :  { %v1129_v55 = vmul.f32 %v1270_v60, %v1126_v35 }
 0xd97   :  { %v1130_v46 = vmul.f32 %v1272_v28, %v1127_v3 }
 0xd98   :  { %v1141_v12 = vadd.f32 %v1129_v55, %v406_v51 }
 0xd99   :  { %v1142_v56 = vadd.f32 %v1130_v46, %v407_v38 }
 0xd9a   :  { %v1144_v7 = vmul.f32 %v1189_v30, %v1141_v12 }
 0xd9b   :  { %v1145_v57 = vmul.f32 %v1190_v34, %v1142_v56 }
 0xd9c   :  { %1148 = vst.msk [vmem:[%s2089_s6 + $0x8] sm:$0xff] %vm1146_vm3, %v1144_v7 }
 0xd9d   :  { %1149 = vst.msk [vmem:[%s2089_s6 + $0x10] sm:$0xff] %vm1146_vm3, %v1145_v57 }
 0xd9e   :  { %1161 = vsyncpa [#allocation3], 1 }
 0xd9f   :  { %1162 = vsyncpa [#allocation5], 1 }

</bundles_post_ra>
